<compile_context>
chip_gen: v7x
topology: tpu7x:2x2x1
jax: 0.10.0
libtpu: 0.0.40
codegen_flags: <defaults>
</compile_context>

<pallas_src>
import functools

import jax
import jax.numpy as jnp
from jax.experimental import pallas as pl
from jax.experimental.pallas import tpu as pltpu

_BN_EPS = 1e-5
_MM_DTYPE = jnp.bfloat16          # matmul-operand dtype (accumulation is always f32)
_VMEM_LIMIT = 32 * 1024 * 1024    # explicit scoped-VMEM budget (fits v5e/v6e/v7x)


def _compiler_params():
    return pltpu.CompilerParams(
        dimension_semantics=("parallel",),
        vmem_limit_bytes=_VMEM_LIMIT,
    )


def _round_up(x, m):
    return ((x + m - 1) // m) * m


# ----------------------------- math helpers ---------------------------------

def _erf_approx(x):
    # Abramowitz & Stegun 7.1.26 (|err| <= 1.5e-7); lowers cleanly on Mosaic.
    a1, a2, a3, a4, a5 = 0.254829592, -0.284496736, 1.421413741, -1.453152027, 1.061405429
    p = 0.3275911
    ax = jnp.abs(x)
    t = 1.0 / (1.0 + p * ax)
    poly = ((((a5 * t + a4) * t + a3) * t + a2) * t + a1) * t
    y = 1.0 - poly * jnp.exp(-ax * ax)
    return jnp.where(x >= 0, y, -y)


def _gelu_exact(x):
    return 0.5 * x * (1.0 + _erf_approx(x * 0.7071067811865476))


def _bn_scale_shift(p):
    s = p["bn_w"] / jnp.sqrt(p["bn_var"] + _BN_EPS)
    t = p["bn_b"] - p["bn_mean"] * s
    return s, t


# ----------------------------- Pallas kernels -------------------------------

def _conv1x1_kernel(x_ref, w_ref, b_ref, o_ref):
    # out(co, m_tile) = W(co, ci) @ x(ci, m_tile) + b(co, 1)
    # Channel-major orientation -> lane-dense output stores.
    acc = jnp.dot(w_ref[...], x_ref[...].astype(_MM_DTYPE),
                  preferred_element_type=jnp.float32)
    o_ref[...] = (acc + b_ref[...]).astype(o_ref.dtype)


def _down_block_kernel(ph_ref, w_ref, b_ref, o_ref, *, ksize, wp, lrows, apply_gelu):
    """Fused down ResampleBlock: stride-2 KxK conv (with the averaged
    pixel-unshuffle residual already folded into the tap weights) + bias +
    optional exact GELU.  The K*K taps are contiguous row-slices of the four
    spatial-parity phases of the (BatchNorm'd, zero-padded) input, which stay
    resident in VMEM -- no im2col / residual streams in HBM."""
    co = o_ref.shape[-1]
    # Load each parity phase from VMEM and cast to the matmul dtype exactly once;
    # the per-tap windows are static slices of these resident values.
    phases = [[ph_ref[0, er, ec].astype(_MM_DTYPE) for ec in range(2)]
              for er in range(2)]
    acc = jnp.zeros((lrows, co), jnp.float32)
    for kh in range(ksize):
        for kw in range(ksize):
            off = (kh // 2) * wp + (kw // 2)
            tap = phases[kh % 2][kw % 2][off:off + lrows, :]
            acc = acc + jnp.dot(tap, w_ref[kh * ksize + kw],
                                preferred_element_type=jnp.float32)
    out = acc + b_ref[...]
    if apply_gelu:
        out = _gelu_exact(out)
    o_ref[0] = out.astype(o_ref.dtype)


def _decode_kernel(z_ref, a_ref, b_ref, o_ref):
    # Entire decode path (all up blocks + output 1x1 conv) folded into one matmul.
    acc = jnp.dot(z_ref[...].astype(_MM_DTYPE), a_ref[...],
                  preferred_element_type=jnp.float32)
    o_ref[...] = (acc + b_ref[...]).astype(o_ref.dtype)


# ----------------------------- pallas_call wrappers --------------------------

def _conv1x1_cm(x_cm, w, b):
    ci, m = x_cm.shape
    co = w.shape[0]
    tile = 256 if m % 256 == 0 else m          # >=2 grid steps at the test shape
    return pl.pallas_call(
        _conv1x1_kernel,
        out_shape=jax.ShapeDtypeStruct((co, m), jnp.float32),
        grid=(m // tile,),
        in_specs=[
            pl.BlockSpec((ci, tile), lambda j: (0, j)),
            pl.BlockSpec((co, ci), lambda j: (0, 0)),
            pl.BlockSpec((co, 1), lambda j: (0, 0)),
        ],
        out_specs=pl.BlockSpec((co, tile), lambda j: (0, j)),
        compiler_params=_compiler_params(),
    )(x_cm, w, b)


def _down_block_call(ph, w_taps, bias, *, ksize, wp, lrows, co, apply_gelu):
    bsz, _, _, prows, c = ph.shape
    kern = functools.partial(_down_block_kernel, ksize=ksize, wp=wp,
                             lrows=lrows, apply_gelu=apply_gelu)
    return pl.pallas_call(
        kern,
        out_shape=jax.ShapeDtypeStruct((bsz, lrows, co), jnp.float32),
        grid=(bsz,),                                  # batch grid -> megacore split
        in_specs=[
            pl.BlockSpec((1, 2, 2, prows, c), lambda b: (b, 0, 0, 0, 0)),
            pl.BlockSpec((ksize * ksize, c, co), lambda b: (0, 0, 0)),
            pl.BlockSpec((1, co), lambda b: (0, 0)),
        ],
        out_specs=pl.BlockSpec((1, lrows, co), lambda b: (b, 0, 0)),
        compiler_params=_compiler_params(),
    )(ph, w_taps, bias)


def _decode_call(z2, a_mat, b_vec):
    m, cz = z2.shape
    d = a_mat.shape[1]
    tm = m // 2 if (m % 2 == 0 and (m // 2) % 8 == 0) else m
    return pl.pallas_call(
        _decode_kernel,
        out_shape=jax.ShapeDtypeStruct((m, d), jnp.float32),
        grid=(m // tm,),
        in_specs=[
            pl.BlockSpec((tm, cz), lambda i: (i, 0)),
            pl.BlockSpec((cz, d), lambda i: (0, 0)),
            pl.BlockSpec((1, d), lambda i: (0, 0)),
        ],
        out_specs=pl.BlockSpec((tm, d), lambda i: (i, 0)),
        compiler_params=_compiler_params(),
    )(z2, a_mat, b_vec)


# ----------------------------- weight / layout prep --------------------------
# (In a real deployment these folds are computed once at load time; they are tiny.)

def _prep_down_weights(blk, ksize, c):
    """Conv weight as K*K taps (C, 2C), with the averaged pixel_unshuffle residual
    folded into the four taps that read the 2x2 input block of each output pixel."""
    w = blk["conv_w"].transpose(2, 3, 1, 0)            # (K, K, C, 2C), (kh, kw, ci, o)
    pad = ksize // 2
    k = jnp.arange(2 * c)
    ci_a = k // 4                                      # first-half source channel
    ci_b = ci_a + c // 2                               # second-half source channel
    ih = (k % 4) // 2
    iw = k % 2
    r = jnp.zeros((ksize, ksize, c, 2 * c), jnp.float32)
    r = r.at[ih + pad, iw + pad, ci_a, k].add(0.5)
    r = r.at[ih + pad, iw + pad, ci_b, k].add(0.5)
    w_taps = (w + r).reshape(ksize * ksize, c, 2 * c).astype(_MM_DTYPE)
    bias = blk["conv_b"].reshape(1, 2 * c).astype(jnp.float32)
    return w_taps, bias


def _prep_phases(y_bn, ksize):
    """Zero-pad the (already BatchNorm'd) NHWC activation and split it into its four
    spatial-parity phases, flattened to (rows, C) slabs (rows padded to x8)."""
    bsz, h, w, c = y_bn.shape
    pad = ksize // 2
    ho, wo = h // 2, w // 2
    hp, wp = ho + pad, wo + pad
    yp = jnp.pad(y_bn, ((0, 0), (pad, pad), (pad, pad), (0, 0)))
    ph = yp.reshape(bsz, hp, 2, wp, 2, c).transpose(0, 2, 4, 1, 3, 5)
    ph = ph.reshape(bsz, 2, 2, hp * wp, c)
    lrows = ho * wp                                    # rows per output (incl. pad cols)
    prows = _round_up(hp * wp + pad, 8)
    ph = jnp.pad(ph, ((0, 0), (0, 0), (0, 0), (0, prows - hp * wp), (0, 0)))
    return ph, ho, wo, wp, lrows


def _fold_decode(up_params, out_w, out_b, cz):
    """Fold the whole decode (N up blocks: BN -> pixel_shuffle -> concat([r,r]) ->
    early return, then the output 1x1 conv) into one (Cz, P*P*Cout) matrix + bias,
    P = 2**num_layers.  The up path is per-channel affine + fixed reindexing, so each
    output pixel is an affine function of the single encoder pixel it descends from."""
    def pshuffle(a):                                   # NHWC-style pixel_shuffle on (P,P,C)
        p0, p1, c = a.shape
        return (a.reshape(p0, p1, c // 4, 2, 2)
                 .transpose(0, 3, 1, 4, 2)
                 .reshape(2 * p0, 2 * p1, c // 4))

    g = jnp.ones((1, 1, cz), jnp.float32)              # scale w.r.t. encoder channels
    h = jnp.zeros((1, 1, cz), jnp.float32)             # shift
    idx = jnp.arange(cz, dtype=jnp.int32).reshape(1, 1, cz)
    for blk in up_params:
        s, t = _bn_scale_shift(blk)
        g = g * s
        h = h * s + t
        g, h, idx = pshuffle(g), pshuffle(h), pshuffle(idx)
        g = jnp.concatenate([g, g], axis=-1)           # concat([r, r]) duplication
        h = jnp.concatenate([h, h], axis=-1)
        idx = jnp.concatenate([idx, idx], axis=-1)
    w = out_w.reshape(out_w.shape[0], out_w.shape[1])  # (Cout, Cfinal)
    onehot = jax.nn.one_hot(idx, cz, dtype=jnp.float32)         # (P, P, Cfinal, Cz)
    a = jnp.einsum("xyc,oc,xycz->xyoz", g, w, onehot)            # (P, P, Cout, Cz)
    bias = out_b[None, None, :] + jnp.einsum("xyc,oc->xyo", h, w)
    p = a.shape[0]
    cout = w.shape[0]
    a_mat = a.transpose(3, 0, 1, 2).reshape(cz, p * p * cout).astype(_MM_DTYPE)
    b_vec = bias.reshape(1, p * p * cout).astype(jnp.float32)
    return a_mat, b_vec, p, cout


# ----------------------------- forward ---------------------------------------

def resae_forward(x_nchw, params, ksize):
    """ResAE.forward (inference-mode BatchNorm).  NCHW in / NCHW out."""
    bsz, cin, h, w = x_nchw.shape
    down = params["down"]
    nl = len(down)
    base = params["input_w"].shape[0]

    # ---- encode: input 1x1 conv with down[0]'s BatchNorm folded in ----------
    if nl > 0:
        s0, t0 = _bn_scale_shift(down[0])
    else:
        s0 = jnp.ones((base,), jnp.float32)
        t0 = jnp.zeros((base,), jnp.float32)
    w_in = params["input_w"].reshape(base, cin)
    w_f = (w_in * s0[:, None]).astype(_MM_DTYPE)
    b_f = (s0 * params["input_b"] + t0).reshape(base, 1).astype(jnp.float32)
    x_cm = x_nchw.transpose(1, 0, 2, 3).reshape(cin, bsz * h * w).astype(jnp.float32)
    y_cm = _conv1x1_cm(x_cm, w_f, b_f)                       # (base, B*H*W), lane-dense
    y = y_cm.reshape(base, bsz, h, w).transpose(1, 2, 3, 0)  # NHWC, BN(down[0]) applied

    # ---- down blocks: one fused pallas_call each -----------------------------
    ch = base
    for i, blk in enumerate(down):
        if i == 0:
            y_bn = y                               # BN already folded into the input conv
        else:
            s, t = _bn_scale_shift(blk)
            y_bn = y * s + t                       # fuses into the phase-split copy below
        ph, ho, wo, wp, lrows = _prep_phases(y_bn, ksize)
        w_taps, bias = _prep_down_weights(blk, ksize, ch)
        out = _down_block_call(ph, w_taps, bias, ksize=ksize, wp=wp, lrows=lrows,
                               co=2 * ch, apply_gelu=(i != nl - 1))
        # rows are (ho, wp)-ordered; drop the width-pad garbage columns.
        y = out.reshape(bsz, ho, wp, 2 * ch)[:, :, :wo, :]
        ch *= 2
    z = y                                          # encoder output, NHWC

    # ---- decode: all up blocks + output conv folded into one matmul ----------
    hs, ws, cz = z.shape[1], z.shape[2], z.shape[3]
    a_mat, b_vec, p, cout = _fold_decode(params["up"], params["output_w"],
                                         params["output_b"], cz)
    z2 = z.reshape(bsz * hs * ws, cz)
    out_flat = _decode_call(z2, a_mat, b_vec)      # (B*hs*ws, P*P*Cout)
    out = (out_flat.reshape(bsz, hs, ws, p, p, cout)
           .transpose(0, 1, 3, 2, 4, 5)
           .reshape(bsz, hs * p, ws * p, cout))
    return out.transpose(0, 3, 1, 2)               # back to NCHW


# ----------------------------- parameter init --------------------------------

def init_params(key, in_ch, base_ch, num_layers, ksize):
    keys = iter(jax.random.split(key, 10 * num_layers + 8))

    def nrm(shape, scale=0.1):
        return scale * jax.random.normal(next(keys), shape, jnp.float32)

    params = {
        "input_w": nrm((base_ch, in_ch, 1, 1)),
        "input_b": nrm((base_ch,)),
    }
    down, up = [], []
    ch = base_ch
    for _ in range(num_layers):
        down.append({
            "bn_w": 1.0 + nrm((ch,)),
            "bn_b": nrm((ch,)),
            "bn_mean": nrm((ch,)),
            "bn_var": 1.0 + jnp.abs(nrm((ch,))),
            "conv_w": nrm((2 * ch, ch, ksize, ksize)),
            "conv_b": nrm((2 * ch,)),
        })
        # up block built with num_channels=ch -> BatchNorm2d(2*ch) is the only
        # parameter its forward actually reaches (ConvTranspose2d is dead code).
        up.insert(0, {
            "bn_w": 1.0 + nrm((2 * ch,)),
            "bn_b": nrm((2 * ch,)),
            "bn_mean": nrm((2 * ch,)),
            "bn_var": 1.0 + jnp.abs(nrm((2 * ch,))),
        })
        ch *= 2
    params["down"] = down
    params["up"] = up
    params["output_w"] = nrm((in_ch, base_ch, 1, 1))
    params["output_b"] = nrm((in_ch,))
    return params


# ----------------------------- plain-JAX reference ---------------------------

def _reference_forward(x_nchw, params, ksize):
    # Straightforward op-by-op (XLA) reference of the same inference-mode forward.
    def conv1x1(x, w_pt, b):
        bb, hh, ww, ci = x.shape
        co = w_pt.shape[0]
        return (x.reshape(-1, ci) @ w_pt.reshape(co, ci).T + b).reshape(bb, hh, ww, co)

    def bn(x, p):
        s, t = _bn_scale_shift(p)
        return x * s + t

    x = jnp.transpose(x_nchw, (0, 2, 3, 1))
    y = conv1x1(x, params["input_w"], params["input_b"])
    nl = len(params["down"])
    for i, blk in enumerate(params["down"]):
        bb, hh, ww, c = y.shape
        ho, wo = hh // 2, ww // 2
        yb = bn(y, blk)
        ru = (yb.reshape(bb, ho, 2, wo, 2, c).transpose(0, 1, 3, 5, 2, 4)
                .reshape(bb, ho, wo, 4 * c))
        r = 0.5 * (ru[..., :2 * c] + ru[..., 2 * c:])
        pad = ksize // 2
        yp = jnp.pad(yb, ((0, 0), (pad, pad), (pad, pad), (0, 0)))
        cols = []
        for kh in range(ksize):
            for kw in range(ksize):
                cols.append(yp[:, kh:kh + 2 * ho:2, kw:kw + 2 * wo:2, :])
        patches = jnp.stack(cols, axis=3).reshape(bb, ho, wo, ksize * ksize * c)
        wmat = blk["conv_w"].transpose(2, 3, 1, 0).reshape(ksize * ksize * c, 2 * c)
        out = patches @ wmat + blk["conv_b"] + r
        y = _gelu_exact(out) if i != nl - 1 else out
    for blk in params["up"]:
        bb, hh, ww, c = y.shape
        yb = bn(y, blk)
        co = c // 4
        r = (yb.reshape(bb, hh, ww, co, 2, 2).transpose(0, 1, 4, 2, 5, 3)
               .reshape(bb, 2 * hh, 2 * ww, co))
        y = jnp.concatenate([r, r], axis=-1)
    out = conv1x1(y, params["output_w"], params["output_b"])
    return jnp.transpose(out, (0, 3, 1, 2))


# ----------------------------- main -------------------------------------------

if __name__ == "__main__":
    key = jax.random.PRNGKey(0)
    k_x, k_p = jax.random.split(key)

    B, CIN, H, W = 2, 4, 16, 16            # PyTorch-convention NCHW input
    BASE_CH, NUM_LAYERS, KSIZE = 8, 2, 3

    x_nchw = jax.random.normal(k_x, (B, CIN, H, W), jnp.float32)
    params = init_params(k_p, CIN, BASE_CH, NUM_LAYERS, KSIZE)

    fwd = jax.jit(resae_forward, static_argnames=("ksize",))
    out_nchw = jax.block_until_ready(fwd(x_nchw, params, ksize=KSIZE))

    assert out_nchw.shape == x_nchw.shape, out_nchw.shape
    assert bool(jnp.all(jnp.isfinite(out_nchw)))

    # Self-check against the plain-JAX reference (f32); the loose tolerance covers
    # the bf16 matmul operands (accumulation is f32, elementwise math is f32).
    ref = _reference_forward(x_nchw, params, KSIZE)
    max_err = float(jnp.max(jnp.abs(out_nchw - ref)))
    mean_err = float(jnp.mean(jnp.abs(out_nchw - ref)))
    assert max_err < 1e-1, f"max abs err vs reference: {max_err}"
    assert mean_err < 2e-2, f"mean abs err vs reference: {mean_err}"

    print("KERNEL_OK")
</pallas_src>

<mosaic_0001>
module attributes {stable_mosaic.version = 11 : i64} {
  func.func private @main(%arg0: i32) attributes {dimension_semantics = [#tpu.dimension_semantics<core_parallel>], iteration_bounds = array<i64: 2>, tpu.core_type = #tpu.core_type<sc_scalar_subcore>, window_params = []} {
    return
  }
}

module attributes {stable_mosaic.version = 11 : i64} {
  func.func private @main(%arg0: i32) attributes {dimension_semantics = [#tpu.dimension_semantics<core_parallel>], iteration_bounds = array<i64: 2>, tpu.core_type = #tpu.core_type<sc_scalar_subcore>, window_params = []} {
    return
  }
}

module attributes {stable_mosaic.version = 11 : i64} {
  func.func @_conv1x1_kernel(%arg0: i32, %arg1: memref<4x256xf32, #tpu.memory_space<vmem>>, %arg2: memref<8x4xbf16, #tpu.memory_space<vmem>>, %arg3: memref<8x1xf32, #tpu.memory_space<vmem>>, %arg4: memref<8x256xf32, #tpu.memory_space<vmem>>) attributes {dimension_semantics = [#tpu.dimension_semantics<parallel>], iteration_bounds = array<i64: 2>, scalar_prefetch = 0 : i64, scratch_operands = 0 : i64, tpu.core_type = #tpu.core_type<tc>, window_params = [{transform_indices = @transform_0, window_bounds = array<i64: 4, 256>}, {pipeline_mode = #tpu.pipeline_mode<synchronous>, transform_indices = @transform_1, window_bounds = array<i64: 8, 4>}, {pipeline_mode = #tpu.pipeline_mode<synchronous>, transform_indices = @transform_2, window_bounds = array<i64: 8, 1>}, {transform_indices = @transform_3, window_bounds = array<i64: 8, 256>}]} {
    %c0 = arith.constant 0 : index
    %c0_0 = arith.constant 0 : index
    %0 = vector.load %arg2[%c0, %c0_0] : memref<8x4xbf16, #tpu.memory_space<vmem>>, vector<8x4xbf16>
    %c0_1 = arith.constant 0 : index
    %c0_2 = arith.constant 0 : index
    %1 = vector.load %arg1[%c0_1, %c0_2] : memref<4x256xf32, #tpu.memory_space<vmem>>, vector<4x256xf32>
    %2 = arith.truncf %1 : vector<4x256xf32> to vector<4x256xbf16>
    %cst = arith.constant dense<0.000000e+00> : vector<8x256xf32>
    %3 = tpu.matmul %0, %2, %cst {dimension_numbers = #tpu.dot_dimension_numbers<[1], [0], [0], [1], [0, 0, 1, 1], [], []>} : vector<8x4xbf16>, vector<4x256xbf16>, vector<8x256xf32> -> vector<8x256xf32>
    %c0_3 = arith.constant 0 : index
    %c0_4 = arith.constant 0 : index
    %4 = vector.load %arg3[%c0_3, %c0_4] : memref<8x1xf32, #tpu.memory_space<vmem>>, vector<8x1xf32>
    %5 = vector.broadcast %4 : vector<8x1xf32> to vector<8x256xf32>
    %6 = arith.addf %3, %5 : vector<8x256xf32>
    %c0_5 = arith.constant 0 : index
    %c0_6 = arith.constant 0 : index
    %7 = vector.load %arg4[%c0_5, %c0_6] : memref<8x256xf32, #tpu.memory_space<vmem>>, vector<8x256xf32>
    tpu.vector_store %arg4[%c0_5, %c0_6], %6 {strides = array<i32>} : memref<8x256xf32, #tpu.memory_space<vmem>>, vector<8x256xf32>,
    return
  }
  func.func @transform_0(%arg0: i32) -> (i32, i32) {
    %c0_i32 = arith.constant 0 : i32
    %c0_i32_0 = arith.constant 0 : i32
    return %c0_i32, %arg0 : i32, i32
  }
  func.func @transform_1(%arg0: i32) -> (i32, i32) {
    %c0_i32 = arith.constant 0 : i32
    %c0_i32_0 = arith.constant 0 : i32
    %c0_i32_1 = arith.constant 0 : i32
    return %c0_i32, %c0_i32_0 : i32, i32
  }
  func.func @transform_2(%arg0: i32) -> (i32, i32) {
    %c0_i32 = arith.constant 0 : i32
    %c0_i32_0 = arith.constant 0 : i32
    %c0_i32_1 = arith.constant 0 : i32
    return %c0_i32, %c0_i32_0 : i32, i32
  }
  func.func @transform_3(%arg0: i32) -> (i32, i32) {
    %c0_i32 = arith.constant 0 : i32
    %c0_i32_0 = arith.constant 0 : i32
    return %c0_i32, %arg0 : i32, i32
  }
}

module attributes {stable_mosaic.version = 11 : i64} {
  func.func @_down_block_kernel(%arg0: i32, %arg1: memref<1x2x2x88x8xf32, #tpu.memory_space<vmem>>, %arg2: memref<9x8x16xbf16, #tpu.memory_space<vmem>>, %arg3: memref<1x16xf32, #tpu.memory_space<vmem>>, %arg4: memref<1x72x16xf32, #tpu.memory_space<vmem>>) attributes {dimension_semantics = [#tpu.dimension_semantics<parallel>], iteration_bounds = array<i64: 2>, scalar_prefetch = 0 : i64, scratch_operands = 0 : i64, tpu.core_type = #tpu.core_type<tc>, window_params = [{transform_indices = @transform_0, window_bounds = array<i64: 1, 2, 2, 88, 8>}, {pipeline_mode = #tpu.pipeline_mode<synchronous>, transform_indices = @transform_1, window_bounds = array<i64: 9, 8, 16>}, {pipeline_mode = #tpu.pipeline_mode<synchronous>, transform_indices = @transform_2, window_bounds = array<i64: 1, 16>}, {transform_indices = @transform_3, window_bounds = array<i64: 1, 72, 16>}]} {
    %c0 = arith.constant 0 : index
    %c0_0 = arith.constant 0 : index
    %c0_1 = arith.constant 0 : index
    %c0_2 = arith.constant 0 : index
    %c0_3 = arith.constant 0 : index
    %0 = vector.load %arg1[%c0, %c0_0, %c0_1, %c0_2, %c0_3] : memref<1x2x2x88x8xf32, #tpu.memory_space<vmem>>, vector<1x1x1x88x8xf32>
    %1 = vector.shape_cast %0 : vector<1x1x1x88x8xf32> to vector<88x8xf32>
    %2 = arith.truncf %1 : vector<88x8xf32> to vector<88x8xbf16>
    %c0_4 = arith.constant 0 : index
    %c0_5 = arith.constant 0 : index
    %c1 = arith.constant 1 : index
    %c0_6 = arith.constant 0 : index
    %c0_7 = arith.constant 0 : index
    %3 = vector.load %arg1[%c0_4, %c0_5, %c1, %c0_6, %c0_7] : memref<1x2x2x88x8xf32, #tpu.memory_space<vmem>>, vector<1x1x1x88x8xf32>
    %4 = vector.shape_cast %3 : vector<1x1x1x88x8xf32> to vector<88x8xf32>
    %5 = arith.truncf %4 : vector<88x8xf32> to vector<88x8xbf16>
    %c0_8 = arith.constant 0 : index
    %c1_9 = arith.constant 1 : index
    %c0_10 = arith.constant 0 : index
    %c0_11 = arith.constant 0 : index
    %c0_12 = arith.constant 0 : index
    %6 = vector.load %arg1[%c0_8, %c1_9, %c0_10, %c0_11, %c0_12] : memref<1x2x2x88x8xf32, #tpu.memory_space<vmem>>, vector<1x1x1x88x8xf32>
    %7 = vector.shape_cast %6 : vector<1x1x1x88x8xf32> to vector<88x8xf32>
    %8 = arith.truncf %7 : vector<88x8xf32> to vector<88x8xbf16>
    %c0_13 = arith.constant 0 : index
    %c1_14 = arith.constant 1 : index
    %c1_15 = arith.constant 1 : index
    %c0_16 = arith.constant 0 : index
    %c0_17 = arith.constant 0 : index
    %9 = vector.load %arg1[%c0_13, %c1_14, %c1_15, %c0_16, %c0_17] : memref<1x2x2x88x8xf32, #tpu.memory_space<vmem>>, vector<1x1x1x88x8xf32>
    %10 = vector.shape_cast %9 : vector<1x1x1x88x8xf32> to vector<88x8xf32>
    %11 = arith.truncf %10 : vector<88x8xf32> to vector<88x8xbf16>
    %cst = arith.constant 0.000000e+00 : f32
    %12 = vector.broadcast %cst : f32 to vector<72x16xf32>
    %13 = vector.extract_strided_slice %2 {offsets = [0, 0], sizes = [72, 8], strides = [1, 1]} : vector<88x8xbf16> to vector<72x8xbf16>
    %c0_18 = arith.constant 0 : index
    %c0_19 = arith.constant 0 : index
    %c0_20 = arith.constant 0 : index
    %14 = vector.load %arg2[%c0_18, %c0_19, %c0_20] : memref<9x8x16xbf16, #tpu.memory_space<vmem>>, vector<1x8x16xbf16>
    %15 = vector.shape_cast %14 : vector<1x8x16xbf16> to vector<8x16xbf16>
    %cst_21 = arith.constant dense<0.000000e+00> : vector<72x16xf32>
    %16 = tpu.matmul %13, %15, %cst_21 {dimension_numbers = #tpu.dot_dimension_numbers<[1], [0], [0], [1], [0, 0, 1, 1], [], []>} : vector<72x8xbf16>, vector<8x16xbf16>, vector<72x16xf32> -> vector<72x16xf32>
    %17 = arith.addf %12, %16 : vector<72x16xf32>
    %18 = vector.extract_strided_slice %5 {offsets = [0, 0], sizes = [72, 8], strides = [1, 1]} : vector<88x8xbf16> to vector<72x8xbf16>
    %c1_22 = arith.constant 1 : index
    %c0_23 = arith.constant 0 : index
    %c0_24 = arith.constant 0 : index
    %19 = vector.load %arg2[%c1_22, %c0_23, %c0_24] : memref<9x8x16xbf16, #tpu.memory_space<vmem>>, vector<1x8x16xbf16>
    %20 = vector.shape_cast %19 : vector<1x8x16xbf16> to vector<8x16xbf16>
    %cst_25 = arith.constant dense<0.000000e+00> : vector<72x16xf32>
    %21 = tpu.matmul %18, %20, %cst_25 {dimension_numbers = #tpu.dot_dimension_numbers<[1], [0], [0], [1], [0, 0, 1, 1], [], []>} : vector<72x8xbf16>, vector<8x16xbf16>, vector<72x16xf32> -> vector<72x16xf32>
    %22 = arith.addf %17, %21 : vector<72x16xf32>
    %23 = vector.extract_strided_slice %2 {offsets = [1, 0], sizes = [72, 8], strides = [1, 1]} : vector<88x8xbf16> to vector<72x8xbf16>
    %c2 = arith.constant 2 : index
    %c0_26 = arith.constant 0 : index
    %c0_27 = arith.constant 0 : index
    %24 = vector.load %arg2[%c2, %c0_26, %c0_27] : memref<9x8x16xbf16, #tpu.memory_space<vmem>>, vector<1x8x16xbf16>
    %25 = vector.shape_cast %24 : vector<1x8x16xbf16> to vector<8x16xbf16>
    %cst_28 = arith.constant dense<0.000000e+00> : vector<72x16xf32>
    %26 = tpu.matmul %23, %25, %cst_28 {dimension_numbers = #tpu.dot_dimension_numbers<[1], [0], [0], [1], [0, 0, 1, 1], [], []>} : vector<72x8xbf16>, vector<8x16xbf16>, vector<72x16xf32> -> vector<72x16xf32>
    %27 = arith.addf %22, %26 : vector<72x16xf32>
    %28 = vector.extract_strided_slice %8 {offsets = [0, 0], sizes = [72, 8], strides = [1, 1]} : vector<88x8xbf16> to vector<72x8xbf16>
    %c3 = arith.constant 3 : index
    %c0_29 = arith.constant 0 : index
    %c0_30 = arith.constant 0 : index
    %29 = vector.load %arg2[%c3, %c0_29, %c0_30] : memref<9x8x16xbf16, #tpu.memory_space<vmem>>, vector<1x8x16xbf16>
    %30 = vector.shape_cast %29 : vector<1x8x16xbf16> to vector<8x16xbf16>
    %cst_31 = arith.constant dense<0.000000e+00> : vector<72x16xf32>
    %31 = tpu.matmul %28, %30, %cst_31 {dimension_numbers = #tpu.dot_dimension_numbers<[1], [0], [0], [1], [0, 0, 1, 1], [], []>} : vector<72x8xbf16>, vector<8x16xbf16>, vector<72x16xf32> -> vector<72x16xf32>
    %32 = arith.addf %27, %31 : vector<72x16xf32>
    %33 = vector.extract_strided_slice %11 {offsets = [0, 0], sizes = [72, 8], strides = [1, 1]} : vector<88x8xbf16> to vector<72x8xbf16>
    %c4 = arith.constant 4 : index
    %c0_32 = arith.constant 0 : index
    %c0_33 = arith.constant 0 : index
    %34 = vector.load %arg2[%c4, %c0_32, %c0_33] : memref<9x8x16xbf16, #tpu.memory_space<vmem>>, vector<1x8x16xbf16>
    %35 = vector.shape_cast %34 : vector<1x8x16xbf16> to vector<8x16xbf16>
    %cst_34 = arith.constant dense<0.000000e+00> : vector<72x16xf32>
    %36 = tpu.matmul %33, %35, %cst_34 {dimension_numbers = #tpu.dot_dimension_numbers<[1], [0], [0], [1], [0, 0, 1, 1], [], []>} : vector<72x8xbf16>, vector<8x16xbf16>, vector<72x16xf32> -> vector<72x16xf32>
    %37 = arith.addf %32, %36 : vector<72x16xf32>
    %38 = vector.extract_strided_slice %8 {offsets = [1, 0], sizes = [72, 8], strides = [1, 1]} : vector<88x8xbf16> to vector<72x8xbf16>
    %c5 = arith.constant 5 : index
    %c0_35 = arith.constant 0 : index
    %c0_36 = arith.constant 0 : index
    %39 = vector.load %arg2[%c5, %c0_35, %c0_36] : memref<9x8x16xbf16, #tpu.memory_space<vmem>>, vector<1x8x16xbf16>
    %40 = vector.shape_cast %39 : vector<1x8x16xbf16> to vector<8x16xbf16>
    %cst_37 = arith.constant dense<0.000000e+00> : vector<72x16xf32>
    %41 = tpu.matmul %38, %40, %cst_37 {dimension_numbers = #tpu.dot_dimension_numbers<[1], [0], [0], [1], [0, 0, 1, 1], [], []>} : vector<72x8xbf16>, vector<8x16xbf16>, vector<72x16xf32> -> vector<72x16xf32>
    %42 = arith.addf %37, %41 : vector<72x16xf32>
    %43 = vector.extract_strided_slice %2 {offsets = [9, 0], sizes = [72, 8], strides = [1, 1]} : vector<88x8xbf16> to vector<72x8xbf16>
    %c6 = arith.constant 6 : index
    %c0_38 = arith.constant 0 : index
    %c0_39 = arith.constant 0 : index
    %44 = vector.load %arg2[%c6, %c0_38, %c0_39] : memref<9x8x16xbf16, #tpu.memory_space<vmem>>, vector<1x8x16xbf16>
    %45 = vector.shape_cast %44 : vector<1x8x16xbf16> to vector<8x16xbf16>
    %cst_40 = arith.constant dense<0.000000e+00> : vector<72x16xf32>
    %46 = tpu.matmul %43, %45, %cst_40 {dimension_numbers = #tpu.dot_dimension_numbers<[1], [0], [0], [1], [0, 0, 1, 1], [], []>} : vector<72x8xbf16>, vector<8x16xbf16>, vector<72x16xf32> -> vector<72x16xf32>
    %47 = arith.addf %42, %46 : vector<72x16xf32>
    %48 = vector.extract_strided_slice %5 {offsets = [9, 0], sizes = [72, 8], strides = [1, 1]} : vector<88x8xbf16> to vector<72x8xbf16>
    %c7 = arith.constant 7 : index
    %c0_41 = arith.constant 0 : index
    %c0_42 = arith.constant 0 : index
    %49 = vector.load %arg2[%c7, %c0_41, %c0_42] : memref<9x8x16xbf16, #tpu.memory_space<vmem>>, vector<1x8x16xbf16>
    %50 = vector.shape_cast %49 : vector<1x8x16xbf16> to vector<8x16xbf16>
    %cst_43 = arith.constant dense<0.000000e+00> : vector<72x16xf32>
    %51 = tpu.matmul %48, %50, %cst_43 {dimension_numbers = #tpu.dot_dimension_numbers<[1], [0], [0], [1], [0, 0, 1, 1], [], []>} : vector<72x8xbf16>, vector<8x16xbf16>, vector<72x16xf32> -> vector<72x16xf32>
    %52 = arith.addf %47, %51 : vector<72x16xf32>
    %53 = vector.extract_strided_slice %2 {offsets = [10, 0], sizes = [72, 8], strides = [1, 1]} : vector<88x8xbf16> to vector<72x8xbf16>
    %c8 = arith.constant 8 : index
    %c0_44 = arith.constant 0 : index
    %c0_45 = arith.constant 0 : index
    %54 = vector.load %arg2[%c8, %c0_44, %c0_45] : memref<9x8x16xbf16, #tpu.memory_space<vmem>>, vector<1x8x16xbf16>
    %55 = vector.shape_cast %54 : vector<1x8x16xbf16> to vector<8x16xbf16>
    %cst_46 = arith.constant dense<0.000000e+00> : vector<72x16xf32>
    %56 = tpu.matmul %53, %55, %cst_46 {dimension_numbers = #tpu.dot_dimension_numbers<[1], [0], [0], [1], [0, 0, 1, 1], [], []>} : vector<72x8xbf16>, vector<8x16xbf16>, vector<72x16xf32> -> vector<72x16xf32>
    %57 = arith.addf %52, %56 : vector<72x16xf32>
    %c0_47 = arith.constant 0 : index
    %c0_48 = arith.constant 0 : index
    %58 = vector.load %arg3[%c0_47, %c0_48] : memref<1x16xf32, #tpu.memory_space<vmem>>, vector<1x16xf32>
    %59 = vector.broadcast %58 : vector<1x16xf32> to vector<72x16xf32>
    %60 = arith.addf %57, %59 : vector<72x16xf32>
    %cst_49 = arith.constant 5.000000e-01 : f32
    %61 = vector.broadcast %cst_49 : f32 to vector<72x16xf32>
    %62 = arith.mulf %61, %60 : vector<72x16xf32>
    %cst_50 = arith.constant 0.707106769 : f32
    %63 = vector.broadcast %cst_50 : f32 to vector<72x16xf32>
    %64 = arith.mulf %60, %63 : vector<72x16xf32>
    %65 = math.absf %64 : vector<72x16xf32>
    %cst_51 = arith.constant 0.327591091 : f32
    %66 = vector.broadcast %cst_51 : f32 to vector<72x16xf32>
    %67 = arith.mulf %66, %65 : vector<72x16xf32>
    %cst_52 = arith.constant 1.000000e+00 : f32
    %68 = vector.broadcast %cst_52 : f32 to vector<72x16xf32>
    %69 = arith.addf %68, %67 : vector<72x16xf32>
    %cst_53 = arith.constant 1.000000e+00 : f32
    %70 = vector.broadcast %cst_53 : f32 to vector<72x16xf32>
    %71 = arith.divf %70, %69 : vector<72x16xf32>
    %cst_54 = arith.constant 1.06140542 : f32
    %72 = vector.broadcast %cst_54 : f32 to vector<72x16xf32>
    %73 = arith.mulf %72, %71 : vector<72x16xf32>
    %cst_55 = arith.constant -1.45315206 : f32
    %74 = vector.broadcast %cst_55 : f32 to vector<72x16xf32>
    %75 = arith.addf %73, %74 : vector<72x16xf32>
    %76 = arith.mulf %75, %71 : vector<72x16xf32>
    %cst_56 = arith.constant 1.42141378 : f32
    %77 = vector.broadcast %cst_56 : f32 to vector<72x16xf32>
    %78 = arith.addf %76, %77 : vector<72x16xf32>
    %79 = arith.mulf %78, %71 : vector<72x16xf32>
    %cst_57 = arith.constant -0.284496725 : f32
    %80 = vector.broadcast %cst_57 : f32 to vector<72x16xf32>
    %81 = arith.addf %79, %80 : vector<72x16xf32>
    %82 = arith.mulf %81, %71 : vector<72x16xf32>
    %cst_58 = arith.constant 0.254829586 : f32
    %83 = vector.broadcast %cst_58 : f32 to vector<72x16xf32>
    %84 = arith.addf %82, %83 : vector<72x16xf32>
    %85 = arith.mulf %84, %71 : vector<72x16xf32>
    %cst_59 = arith.constant 0.000000e+00 : f32
    %86 = vector.broadcast %cst_59 : f32 to vector<72x16xf32>
    %87 = arith.subf %86, %65 : vector<72x16xf32>
    %88 = arith.mulf %87, %65 : vector<72x16xf32>
    %89 = math.exp %88 : vector<72x16xf32>
    %90 = arith.mulf %85, %89 : vector<72x16xf32>
    %cst_60 = arith.constant 1.000000e+00 : f32
    %91 = vector.broadcast %cst_60 : f32 to vector<72x16xf32>
    %92 = arith.subf %91, %90 : vector<72x16xf32>
    %cst_61 = arith.constant 0.000000e+00 : f32
    %93 = vector.broadcast %cst_61 : f32 to vector<72x16xf32>
    %94 = arith.cmpf oge, %64, %93 : vector<72x16xf32>
    %cst_62 = arith.constant 0.000000e+00 : f32
    %95 = vector.broadcast %cst_62 : f32 to vector<72x16xf32>
    %96 = arith.subf %95, %92 : vector<72x16xf32>
    %97 = arith.select %94, %92, %96 : vector<72x16xi1>, vector<72x16xf32>
    %cst_63 = arith.constant 1.000000e+00 : f32
    %98 = vector.broadcast %cst_63 : f32 to vector<72x16xf32>
    %99 = arith.addf %98, %97 : vector<72x16xf32>
    %100 = arith.mulf %62, %99 : vector<72x16xf32>
    %c0_64 = arith.constant 0 : index
    %c0_65 = arith.constant 0 : index
    %c0_66 = arith.constant 0 : index
    %101 = vector.load %arg4[%c0_64, %c0_65, %c0_66] : memref<1x72x16xf32, #tpu.memory_space<vmem>>, vector<1x72x16xf32>
    %102 = vector.shape_cast %101 : vector<1x72x16xf32> to vector<72x16xf32>
    %103 = vector.shape_cast %100 : vector<72x16xf32> to vector<1x72x16xf32>
    tpu.vector_store %arg4[%c0_64, %c0_65, %c0_66], %103 {strides = array<i32>} : memref<1x72x16xf32, #tpu.memory_space<vmem>>, vector<1x72x16xf32>,
    return
  }
  func.func @transform_0(%arg0: i32) -> (i32, i32, i32, i32, i32) {
    %c0_i32 = arith.constant 0 : i32
    %c0_i32_0 = arith.constant 0 : i32
    %c0_i32_1 = arith.constant 0 : i32
    %c0_i32_2 = arith.constant 0 : i32
    %c0_i32_3 = arith.constant 0 : i32
    return %arg0, %c0_i32, %c0_i32_0, %c0_i32_1, %c0_i32_2 : i32, i32, i32, i32, i32
  }
  func.func @transform_1(%arg0: i32) -> (i32, i32, i32) {
    %c0_i32 = arith.constant 0 : i32
    %c0_i32_0 = arith.constant 0 : i32
    %c0_i32_1 = arith.constant 0 : i32
    %c0_i32_2 = arith.constant 0 : i32
    return %c0_i32, %c0_i32_0, %c0_i32_1 : i32, i32, i32
  }
  func.func @transform_2(%arg0: i32) -> (i32, i32) {
    %c0_i32 = arith.constant 0 : i32
    %c0_i32_0 = arith.constant 0 : i32
    %c0_i32_1 = arith.constant 0 : i32
    return %c0_i32, %c0_i32_0 : i32, i32
  }
  func.func @transform_3(%arg0: i32) -> (i32, i32, i32) {
    %c0_i32 = arith.constant 0 : i32
    %c0_i32_0 = arith.constant 0 : i32
    %c0_i32_1 = arith.constant 0 : i32
    return %arg0, %c0_i32, %c0_i32_0 : i32, i32, i32
  }
}

module attributes {stable_mosaic.version = 11 : i64} {
  func.func @_down_block_kernel(%arg0: i32, %arg1: memref<1x2x2x32x16xf32, #tpu.memory_space<vmem>>, %arg2: memref<9x16x32xbf16, #tpu.memory_space<vmem>>, %arg3: memref<1x32xf32, #tpu.memory_space<vmem>>, %arg4: memref<1x20x32xf32, #tpu.memory_space<vmem>>) attributes {dimension_semantics = [#tpu.dimension_semantics<parallel>], iteration_bounds = array<i64: 2>, scalar_prefetch = 0 : i64, scratch_operands = 0 : i64, tpu.core_type = #tpu.core_type<tc>, window_params = [{transform_indices = @transform_0, window_bounds = array<i64: 1, 2, 2, 32, 16>}, {pipeline_mode = #tpu.pipeline_mode<synchronous>, transform_indices = @transform_1, window_bounds = array<i64: 9, 16, 32>}, {pipeline_mode = #tpu.pipeline_mode<synchronous>, transform_indices = @transform_2, window_bounds = array<i64: 1, 32>}, {transform_indices = @transform_3, window_bounds = array<i64: 1, 20, 32>}]} {
    %c0 = arith.constant 0 : index
    %c0_0 = arith.constant 0 : index
    %c0_1 = arith.constant 0 : index
    %c0_2 = arith.constant 0 : index
    %c0_3 = arith.constant 0 : index
    %0 = vector.load %arg1[%c0, %c0_0, %c0_1, %c0_2, %c0_3] : memref<1x2x2x32x16xf32, #tpu.memory_space<vmem>>, vector<1x1x1x32x16xf32>
    %1 = vector.shape_cast %0 : vector<1x1x1x32x16xf32> to vector<32x16xf32>
    %2 = arith.truncf %1 : vector<32x16xf32> to vector<32x16xbf16>
    %c0_4 = arith.constant 0 : index
    %c0_5 = arith.constant 0 : index
    %c1 = arith.constant 1 : index
    %c0_6 = arith.constant 0 : index
    %c0_7 = arith.constant 0 : index
    %3 = vector.load %arg1[%c0_4, %c0_5, %c1, %c0_6, %c0_7] : memref<1x2x2x32x16xf32, #tpu.memory_space<vmem>>, vector<1x1x1x32x16xf32>
    %4 = vector.shape_cast %3 : vector<1x1x1x32x16xf32> to vector<32x16xf32>
    %5 = arith.truncf %4 : vector<32x16xf32> to vector<32x16xbf16>
    %c0_8 = arith.constant 0 : index
    %c1_9 = arith.constant 1 : index
    %c0_10 = arith.constant 0 : index
    %c0_11 = arith.constant 0 : index
    %c0_12 = arith.constant 0 : index
    %6 = vector.load %arg1[%c0_8, %c1_9, %c0_10, %c0_11, %c0_12] : memref<1x2x2x32x16xf32, #tpu.memory_space<vmem>>, vector<1x1x1x32x16xf32>
    %7 = vector.shape_cast %6 : vector<1x1x1x32x16xf32> to vector<32x16xf32>
    %8 = arith.truncf %7 : vector<32x16xf32> to vector<32x16xbf16>
    %c0_13 = arith.constant 0 : index
    %c1_14 = arith.constant 1 : index
    %c1_15 = arith.constant 1 : index
    %c0_16 = arith.constant 0 : index
    %c0_17 = arith.constant 0 : index
    %9 = vector.load %arg1[%c0_13, %c1_14, %c1_15, %c0_16, %c0_17] : memref<1x2x2x32x16xf32, #tpu.memory_space<vmem>>, vector<1x1x1x32x16xf32>
    %10 = vector.shape_cast %9 : vector<1x1x1x32x16xf32> to vector<32x16xf32>
    %11 = arith.truncf %10 : vector<32x16xf32> to vector<32x16xbf16>
    %cst = arith.constant 0.000000e+00 : f32
    %12 = vector.broadcast %cst : f32 to vector<20x32xf32>
    %13 = vector.extract_strided_slice %2 {offsets = [0, 0], sizes = [20, 16], strides = [1, 1]} : vector<32x16xbf16> to vector<20x16xbf16>
    %c0_18 = arith.constant 0 : index
    %c0_19 = arith.constant 0 : index
    %c0_20 = arith.constant 0 : index
    %14 = vector.load %arg2[%c0_18, %c0_19, %c0_20] : memref<9x16x32xbf16, #tpu.memory_space<vmem>>, vector<1x16x32xbf16>
    %15 = vector.shape_cast %14 : vector<1x16x32xbf16> to vector<16x32xbf16>
    %cst_21 = arith.constant dense<0.000000e+00> : vector<20x32xf32>
    %16 = tpu.matmul %13, %15, %cst_21 {dimension_numbers = #tpu.dot_dimension_numbers<[1], [0], [0], [1], [0, 0, 1, 1], [], []>} : vector<20x16xbf16>, vector<16x32xbf16>, vector<20x32xf32> -> vector<20x32xf32>
    %17 = arith.addf %12, %16 : vector<20x32xf32>
    %18 = vector.extract_strided_slice %5 {offsets = [0, 0], sizes = [20, 16], strides = [1, 1]} : vector<32x16xbf16> to vector<20x16xbf16>
    %c1_22 = arith.constant 1 : index
    %c0_23 = arith.constant 0 : index
    %c0_24 = arith.constant 0 : index
    %19 = vector.load %arg2[%c1_22, %c0_23, %c0_24] : memref<9x16x32xbf16, #tpu.memory_space<vmem>>, vector<1x16x32xbf16>
    %20 = vector.shape_cast %19 : vector<1x16x32xbf16> to vector<16x32xbf16>
    %cst_25 = arith.constant dense<0.000000e+00> : vector<20x32xf32>
    %21 = tpu.matmul %18, %20, %cst_25 {dimension_numbers = #tpu.dot_dimension_numbers<[1], [0], [0], [1], [0, 0, 1, 1], [], []>} : vector<20x16xbf16>, vector<16x32xbf16>, vector<20x32xf32> -> vector<20x32xf32>
    %22 = arith.addf %17, %21 : vector<20x32xf32>
    %23 = vector.extract_strided_slice %2 {offsets = [1, 0], sizes = [20, 16], strides = [1, 1]} : vector<32x16xbf16> to vector<20x16xbf16>
    %c2 = arith.constant 2 : index
    %c0_26 = arith.constant 0 : index
    %c0_27 = arith.constant 0 : index
    %24 = vector.load %arg2[%c2, %c0_26, %c0_27] : memref<9x16x32xbf16, #tpu.memory_space<vmem>>, vector<1x16x32xbf16>
    %25 = vector.shape_cast %24 : vector<1x16x32xbf16> to vector<16x32xbf16>
    %cst_28 = arith.constant dense<0.000000e+00> : vector<20x32xf32>
    %26 = tpu.matmul %23, %25, %cst_28 {dimension_numbers = #tpu.dot_dimension_numbers<[1], [0], [0], [1], [0, 0, 1, 1], [], []>} : vector<20x16xbf16>, vector<16x32xbf16>, vector<20x32xf32> -> vector<20x32xf32>
    %27 = arith.addf %22, %26 : vector<20x32xf32>
    %28 = vector.extract_strided_slice %8 {offsets = [0, 0], sizes = [20, 16], strides = [1, 1]} : vector<32x16xbf16> to vector<20x16xbf16>
    %c3 = arith.constant 3 : index
    %c0_29 = arith.constant 0 : index
    %c0_30 = arith.constant 0 : index
    %29 = vector.load %arg2[%c3, %c0_29, %c0_30] : memref<9x16x32xbf16, #tpu.memory_space<vmem>>, vector<1x16x32xbf16>
    %30 = vector.shape_cast %29 : vector<1x16x32xbf16> to vector<16x32xbf16>
    %cst_31 = arith.constant dense<0.000000e+00> : vector<20x32xf32>
    %31 = tpu.matmul %28, %30, %cst_31 {dimension_numbers = #tpu.dot_dimension_numbers<[1], [0], [0], [1], [0, 0, 1, 1], [], []>} : vector<20x16xbf16>, vector<16x32xbf16>, vector<20x32xf32> -> vector<20x32xf32>
    %32 = arith.addf %27, %31 : vector<20x32xf32>
    %33 = vector.extract_strided_slice %11 {offsets = [0, 0], sizes = [20, 16], strides = [1, 1]} : vector<32x16xbf16> to vector<20x16xbf16>
    %c4 = arith.constant 4 : index
    %c0_32 = arith.constant 0 : index
    %c0_33 = arith.constant 0 : index
    %34 = vector.load %arg2[%c4, %c0_32, %c0_33] : memref<9x16x32xbf16, #tpu.memory_space<vmem>>, vector<1x16x32xbf16>
    %35 = vector.shape_cast %34 : vector<1x16x32xbf16> to vector<16x32xbf16>
    %cst_34 = arith.constant dense<0.000000e+00> : vector<20x32xf32>
    %36 = tpu.matmul %33, %35, %cst_34 {dimension_numbers = #tpu.dot_dimension_numbers<[1], [0], [0], [1], [0, 0, 1, 1], [], []>} : vector<20x16xbf16>, vector<16x32xbf16>, vector<20x32xf32> -> vector<20x32xf32>
    %37 = arith.addf %32, %36 : vector<20x32xf32>
    %38 = vector.extract_strided_slice %8 {offsets = [1, 0], sizes = [20, 16], strides = [1, 1]} : vector<32x16xbf16> to vector<20x16xbf16>
    %c5 = arith.constant 5 : index
    %c0_35 = arith.constant 0 : index
    %c0_36 = arith.constant 0 : index
    %39 = vector.load %arg2[%c5, %c0_35, %c0_36] : memref<9x16x32xbf16, #tpu.memory_space<vmem>>, vector<1x16x32xbf16>
    %40 = vector.shape_cast %39 : vector<1x16x32xbf16> to vector<16x32xbf16>
    %cst_37 = arith.constant dense<0.000000e+00> : vector<20x32xf32>
    %41 = tpu.matmul %38, %40, %cst_37 {dimension_numbers = #tpu.dot_dimension_numbers<[1], [0], [0], [1], [0, 0, 1, 1], [], []>} : vector<20x16xbf16>, vector<16x32xbf16>, vector<20x32xf32> -> vector<20x32xf32>
    %42 = arith.addf %37, %41 : vector<20x32xf32>
    %43 = vector.extract_strided_slice %2 {offsets = [5, 0], sizes = [20, 16], strides = [1, 1]} : vector<32x16xbf16> to vector<20x16xbf16>
    %c6 = arith.constant 6 : index
    %c0_38 = arith.constant 0 : index
    %c0_39 = arith.constant 0 : index
    %44 = vector.load %arg2[%c6, %c0_38, %c0_39] : memref<9x16x32xbf16, #tpu.memory_space<vmem>>, vector<1x16x32xbf16>
    %45 = vector.shape_cast %44 : vector<1x16x32xbf16> to vector<16x32xbf16>
    %cst_40 = arith.constant dense<0.000000e+00> : vector<20x32xf32>
    %46 = tpu.matmul %43, %45, %cst_40 {dimension_numbers = #tpu.dot_dimension_numbers<[1], [0], [0], [1], [0, 0, 1, 1], [], []>} : vector<20x16xbf16>, vector<16x32xbf16>, vector<20x32xf32> -> vector<20x32xf32>
    %47 = arith.addf %42, %46 : vector<20x32xf32>
    %48 = vector.extract_strided_slice %5 {offsets = [5, 0], sizes = [20, 16], strides = [1, 1]} : vector<32x16xbf16> to vector<20x16xbf16>
    %c7 = arith.constant 7 : index
    %c0_41 = arith.constant 0 : index
    %c0_42 = arith.constant 0 : index
    %49 = vector.load %arg2[%c7, %c0_41, %c0_42] : memref<9x16x32xbf16, #tpu.memory_space<vmem>>, vector<1x16x32xbf16>
    %50 = vector.shape_cast %49 : vector<1x16x32xbf16> to vector<16x32xbf16>
    %cst_43 = arith.constant dense<0.000000e+00> : vector<20x32xf32>
    %51 = tpu.matmul %48, %50, %cst_43 {dimension_numbers = #tpu.dot_dimension_numbers<[1], [0], [0], [1], [0, 0, 1, 1], [], []>} : vector<20x16xbf16>, vector<16x32xbf16>, vector<20x32xf32> -> vector<20x32xf32>
    %52 = arith.addf %47, %51 : vector<20x32xf32>
    %53 = vector.extract_strided_slice %2 {offsets = [6, 0], sizes = [20, 16], strides = [1, 1]} : vector<32x16xbf16> to vector<20x16xbf16>
    %c8 = arith.constant 8 : index
    %c0_44 = arith.constant 0 : index
    %c0_45 = arith.constant 0 : index
    %54 = vector.load %arg2[%c8, %c0_44, %c0_45] : memref<9x16x32xbf16, #tpu.memory_space<vmem>>, vector<1x16x32xbf16>
    %55 = vector.shape_cast %54 : vector<1x16x32xbf16> to vector<16x32xbf16>
    %cst_46 = arith.constant dense<0.000000e+00> : vector<20x32xf32>
    %56 = tpu.matmul %53, %55, %cst_46 {dimension_numbers = #tpu.dot_dimension_numbers<[1], [0], [0], [1], [0, 0, 1, 1], [], []>} : vector<20x16xbf16>, vector<16x32xbf16>, vector<20x32xf32> -> vector<20x32xf32>
    %57 = arith.addf %52, %56 : vector<20x32xf32>
    %c0_47 = arith.constant 0 : index
    %c0_48 = arith.constant 0 : index
    %58 = vector.load %arg3[%c0_47, %c0_48] : memref<1x32xf32, #tpu.memory_space<vmem>>, vector<1x32xf32>
    %59 = vector.broadcast %58 : vector<1x32xf32> to vector<20x32xf32>
    %60 = arith.addf %57, %59 : vector<20x32xf32>
    %c0_49 = arith.constant 0 : index
    %c0_50 = arith.constant 0 : index
    %c0_51 = arith.constant 0 : index
    %61 = vector.load %arg4[%c0_49, %c0_50, %c0_51] : memref<1x20x32xf32, #tpu.memory_space<vmem>>, vector<1x20x32xf32>
    %62 = vector.shape_cast %61 : vector<1x20x32xf32> to vector<20x32xf32>
    %63 = vector.shape_cast %60 : vector<20x32xf32> to vector<1x20x32xf32>
    tpu.vector_store %arg4[%c0_49, %c0_50, %c0_51], %63 {strides = array<i32>} : memref<1x20x32xf32, #tpu.memory_space<vmem>>, vector<1x20x32xf32>,
    return
  }
  func.func @transform_0(%arg0: i32) -> (i32, i32, i32, i32, i32) {
    %c0_i32 = arith.constant 0 : i32
    %c0_i32_0 = arith.constant 0 : i32
    %c0_i32_1 = arith.constant 0 : i32
    %c0_i32_2 = arith.constant 0 : i32
    %c0_i32_3 = arith.constant 0 : i32
    return %arg0, %c0_i32, %c0_i32_0, %c0_i32_1, %c0_i32_2 : i32, i32, i32, i32, i32
  }
  func.func @transform_1(%arg0: i32) -> (i32, i32, i32) {
    %c0_i32 = arith.constant 0 : i32
    %c0_i32_0 = arith.constant 0 : i32
    %c0_i32_1 = arith.constant 0 : i32
    %c0_i32_2 = arith.constant 0 : i32
    return %c0_i32, %c0_i32_0, %c0_i32_1 : i32, i32, i32
  }
  func.func @transform_2(%arg0: i32) -> (i32, i32) {
    %c0_i32 = arith.constant 0 : i32
    %c0_i32_0 = arith.constant 0 : i32
    %c0_i32_1 = arith.constant 0 : i32
    return %c0_i32, %c0_i32_0 : i32, i32
  }
  func.func @transform_3(%arg0: i32) -> (i32, i32, i32) {
    %c0_i32 = arith.constant 0 : i32
    %c0_i32_0 = arith.constant 0 : i32
    %c0_i32_1 = arith.constant 0 : i32
    return %arg0, %c0_i32, %c0_i32_0 : i32, i32, i32
  }
}

module attributes {stable_mosaic.version = 11 : i64} {
  func.func @_decode_kernel(%arg0: i32, %arg1: memref<16x32xf32, #tpu.memory_space<vmem>>, %arg2: memref<32x64xbf16, #tpu.memory_space<vmem>>, %arg3: memref<1x64xf32, #tpu.memory_space<vmem>>, %arg4: memref<16x64xf32, #tpu.memory_space<vmem>>) attributes {dimension_semantics = [#tpu.dimension_semantics<parallel>], iteration_bounds = array<i64: 2>, scalar_prefetch = 0 : i64, scratch_operands = 0 : i64, tpu.core_type = #tpu.core_type<tc>, window_params = [{transform_indices = @transform_0, window_bounds = array<i64: 16, 32>}, {pipeline_mode = #tpu.pipeline_mode<synchronous>, transform_indices = @transform_1, window_bounds = array<i64: 32, 64>}, {pipeline_mode = #tpu.pipeline_mode<synchronous>, transform_indices = @transform_2, window_bounds = array<i64: 1, 64>}, {transform_indices = @transform_3, window_bounds = array<i64: 16, 64>}]} {
    %c0 = arith.constant 0 : index
    %c0_0 = arith.constant 0 : index
    %0 = vector.load %arg1[%c0, %c0_0] : memref<16x32xf32, #tpu.memory_space<vmem>>, vector<16x32xf32>
    %1 = arith.truncf %0 : vector<16x32xf32> to vector<16x32xbf16>
    %c0_1 = arith.constant 0 : index
    %c0_2 = arith.constant 0 : index
    %2 = vector.load %arg2[%c0_1, %c0_2] : memref<32x64xbf16, #tpu.memory_space<vmem>>, vector<32x64xbf16>
    %cst = arith.constant dense<0.000000e+00> : vector<16x64xf32>
    %3 = tpu.matmul %1, %2, %cst {dimension_numbers = #tpu.dot_dimension_numbers<[1], [0], [0], [1], [0, 0, 1, 1], [], []>} : vector<16x32xbf16>, vector<32x64xbf16>, vector<16x64xf32> -> vector<16x64xf32>
    %c0_3 = arith.constant 0 : index
    %c0_4 = arith.constant 0 : index
    %4 = vector.load %arg3[%c0_3, %c0_4] : memref<1x64xf32, #tpu.memory_space<vmem>>, vector<1x64xf32>
    %5 = vector.broadcast %4 : vector<1x64xf32> to vector<16x64xf32>
    %6 = arith.addf %3, %5 : vector<16x64xf32>
    %c0_5 = arith.constant 0 : index
    %c0_6 = arith.constant 0 : index
    %7 = vector.load %arg4[%c0_5, %c0_6] : memref<16x64xf32, #tpu.memory_space<vmem>>, vector<16x64xf32>
    tpu.vector_store %arg4[%c0_5, %c0_6], %6 {strides = array<i32>} : memref<16x64xf32, #tpu.memory_space<vmem>>, vector<16x64xf32>,
    return
  }
  func.func @transform_0(%arg0: i32) -> (i32, i32) {
    %c0_i32 = arith.constant 0 : i32
    %c0_i32_0 = arith.constant 0 : i32
    return %arg0, %c0_i32 : i32, i32
  }
  func.func @transform_1(%arg0: i32) -> (i32, i32) {
    %c0_i32 = arith.constant 0 : i32
    %c0_i32_0 = arith.constant 0 : i32
    %c0_i32_1 = arith.constant 0 : i32
    return %c0_i32, %c0_i32_0 : i32, i32
  }
  func.func @transform_2(%arg0: i32) -> (i32, i32) {
    %c0_i32 = arith.constant 0 : i32
    %c0_i32_0 = arith.constant 0 : i32
    %c0_i32_1 = arith.constant 0 : i32
    return %c0_i32, %c0_i32_0 : i32, i32
  }
  func.func @transform_3(%arg0: i32) -> (i32, i32) {
    %c0_i32 = arith.constant 0 : i32
    %c0_i32_0 = arith.constant 0 : i32
    return %arg0, %c0_i32 : i32, i32
  }
}

</mosaic_0001>

<bundles_post_ra>
// kernel: resae_forward.4
= control target key start
LH: loop header
LB: loop body
LE: loop exit
PB: predicated region body
PF: predicated region fallthrough
CT: control target
= control target key end

     0   :  { %s351_s12 = smov 0   ;;  %s374_s0 = inlined_call_operand.vmem [shape: f32[4,512], index: 0, kind: input, shape index: {}]   ;;  %s375_s1 = inlined_call_operand.vmem [shape: bf16[8,4], index: 1, kind: input, shape index: {}]   ;;  %s376_s2 = inlined_call_operand.vmem [shape: f32[8,1], index: 2, kind: input, shape index: {}]   ;;  %s377_s3 = inlined_call_operand.vmem [shape: f32[8,512], index: 3, kind: output, shape index: {}]  }
   0x1 LB: > { %s298_s13 = sadd.s32 4294967295, %s328_s12   ;;  %p302_p0 = scmp.ge.s32.totalorder %s328_s12, 1  ;;  %s328_s12 = sphi %s351_s12, %s13_s12  }
   0x2   : > { %p138_p1 = scmp.lt.s32.totalorder %s328_s12, 3 }
   0x4   : > { %p139_p2 = pnand %p302_p0, %p138_p1 }
   0x5   : > { %s303_s14 = sshll.u32 (!%p139_p2), %s298_s13, 1  ;;  %v330_v0 = vmov (!%p139_p2), 0   ;;  %v182_v1 = vld [vmem:[%s376_s2] sm:$0xff] (!%p139_p2)  ;;  %vm192_vm0 = vcmask (!%p139_p2), 1041408   ;;  %vm188_vm1 = vcmask (!%p139_p2), 31744  }
   0x6   : > { %142 = sbr.rel (%p139_p2) target bundleno = 241 (0xf1), region = 32  ;;  %p163_p3 = scmp.lt.s32.totalorder (!%p139_p2), %s303_s14, 3  ;;  %231 = vmatprep.mubr.bf16.mxu0 (!%p139_p2), %v330_v0  ;;  %320 = vset.pattern.permute.xlu0 (!%p139_p2), %v330_v0  ;;  %v175_v7 = vld [vmem:[%s375_s1] sm:$0xf] (!%p139_p2) }
   0x7   : > { %185 = vperm.xlu0 (!%p139_p2), %320, %v182_v1  }
   0xd   : > { %s379_s14 = smov (!%p163_p3, %s303_s14), 3 }
   0xe   : > { %s304_s17 = sshll.u32 %s379_s14, 2  ;;  %s306_s23 = sshll.u32 %s379_s14, 3 }
   0xf   : > { %s166_s20 = scalar_lea.vmem %s374_s0, %s304_s17  ;;  %s172_s26 = scalar_lea.vmem %s377_s3, %s306_s23 }
  0x10   : > { %v176_v2 = vld [vmem:[%s166_s20] sm:$0xff] }
  0x11   : > { %v178_v3 = vcombine.high %v176_v2, %v176_v2  ;;  %v180_v4 = vpack.c.bf16 %v176_v2, %v176_v2 }
  0x13   : > { %v181_v5 = vpack.c.bf16 %v178_v3, %v178_v3  ;;  %v194_v6 = vsel %vm192_vm0, %v180_v4, 0 }
  0x15   : > { %307 = vmatprep.subr.msk.bf16.mxu0 %vm192_vm0, %v181_v5 }
  0x16   : > { %200 = vmatpush1.bf16.msra.mxu0 %v194_v6 }
  0x19   : > { %308 = vmatmul.mubr.msk.bf16.vlgmr.msra.gmra.mrb[0].mxu0 %vm188_vm1, %v175_v7 }
  0x86   : > { %v186_v8 = vpop.permute.xlu0 %185 }
  0xec   : > { %v233_v9 = vpop.f32.mrb[0].mxu0 }
  0xed   : > { %v234_v10 = vadd.f32 %v233_v9, %v186_v8  ;;  %v235_v11 = vpop.f32.mrb[1].mxu0 }
  0xee   : > { %v236_v12 = vadd.f32 %v235_v11, %v186_v8  ;;  %v237_v13 = vpop.f32.mrb[2].mxu0 }
  0xef   : > { %240 = vst [vmem:[%s172_s26] sm:$0xff] %v234_v10  ;;  %v238_v14 = vpop.f32.mrb[3].mxu0 }
  0xf0   : > { %241 = vst [vmem:[%s172_s26 + $0x8] sm:$0xff] %v236_v12 }
  0xf1 PF: > { %s13_s12 = sadd.s32 1, %s328_s12  }
  0xf2   : > { %p10_p4 = scmp.ge.s32.totalorder %s13_s12, 4  }
  0xf4   :  { %12 = sbr.rel (!%p10_p4) target bundleno = 1 (0x1), region = 62 }

// kernel: resae_forward.5
= control target key start
LH: loop header
LB: loop body
LE: loop exit
PB: predicated region body
PF: predicated region fallthrough
CT: control target
= control target key end

     0   :  { %s2037_s12 = smov 0   ;;  %s2678_s0 = inlined_call_operand.vmem [shape: f32[2,2,2,88,8], index: 0, kind: input, shape index: {}]   ;;  %s2679_s1 = inlined_call_operand.vmem [shape: bf16[9,8,16], index: 1, kind: input, shape index: {}]   ;;  %s2680_s2 = inlined_call_operand.vmem [shape: f32[1,16], index: 2, kind: input, shape index: {}]   ;;  %s2681_s3 = inlined_call_operand.vmem [shape: f32[2,72,16], index: 3, kind: output, shape index: {}]  }
   0x1 LB: > { %s1611_s13 = sadd.s32 4294967295, %s2013_s12   ;;  %p1615_p0 = scmp.ge.s32.totalorder %s2013_s12, 1  ;;  %s2013_s12 = sphi %s2037_s12, %s13_s12  }
   0x2   : > { %p137_p1 = scmp.lt.s32.totalorder %s2013_s12, 3 }
   0x4   : > { %p138_p2 = pnand %p1615_p0, %p137_p1 }
   0x5   : > { %v1649_v0 = vld [vmem:[%s2679_s1 + $0x4] sm:$0xf] (!%p138_p2)  ;;  %vm258_vm0 = vcmask (!%p138_p2), 1043456   ;;  %p161_p3 = scmp.lt.s32.totalorder (!%p138_p2), %s1611_s13, 1  ;;  %v2015_v1 = vmov (!%p138_p2), 0.0   ;;  %vm2016_vm1 = vmmov (!%p138_p2), 0  }
   0x6   : > { %141 = sbr.rel (%p138_p2) target bundleno = 469 (0x1d5), region = 32  ;;  %1759 = vmatprep.subr.bf16.mxu0 (!%p138_p2), %v2015_v1  ;;  %1957 = vmatprep.subr.bf16.mxu1 (!%p138_p2), %v2015_v1  ;;  %v260_v2 = vsel (!%p138_p2), %vm258_vm0, %v1649_v0, 0  ;;  %v1660_v3 = vld [vmem:[%s2679_s1 + $0x8] sm:$0xf] (!%p138_p2)  ;;  %v239_v4 = vld [vmem:[%s2679_s1] sm:$0xf] (!%p138_p2) }
   0x7   : > { %1760 = vmatpush3.bf16.msra.mxu0 (!%p138_p2), %v260_v2  ;;  %1958 = vmatpush3.bf16.msra.mxu1 (!%p138_p2), %v260_v2  ;;  %vm242_vm2 = vcmask (!%p138_p2), 64512   ;;  %v477_v10 = vsel (!%p138_p2), %vm258_vm0, %v1660_v3, 0  ;;  %v350_v12 = vsel (!%p138_p2), %vm258_vm0, %v239_v4, 0  ;;  %v1666_v28 = vld [vmem:[%s2679_s1 + $0xc] sm:$0xf] (!%p138_p2)  ;;  %vm1176_vm5 = vcmask (!%p138_p2), 1042432  }
   0x8   : > { %1761 = vmatprep.mubr.msk.bf16.mxu0 (!%p138_p2), %vm2016_vm1, %v2015_v1  ;;  %1773 = vmatprep.mubr.msk.bf16.mxu1 (!%p138_p2), %vm2016_vm1, %v2015_v1  ;;  %v1672_v30 = vld [vmem:[%s2679_s1 + $0x10] sm:$0xf] (!%p138_p2)  ;;  %v578_v46 = vsel (!%p138_p2), %vm258_vm0, %v1666_v28, 0  ;;  %vm899_vm3 = vsmask.f32 (!%p138_p2), 3328  ;;  %vm1546_vm7 = vcmask (!%p138_p2), 130048  }
   0x9   : > { %1803 = vmatprep.subr.bf16.mxu0 (!%p138_p2), %v2015_v1  ;;  %1781 = vmatprep.subr.bf16.mxu1 (!%p138_p2), %v2015_v1  ;;  %v2128_v47 = vsel (!%p138_p2), %vm258_vm0, %v1672_v30, 0  ;;  %vm426_vm4 = vsmask.f32 (!%p138_p2), 7424 }
   0xd   : > { %s2683_s13 = smov (!%p161_p3, %s1611_s13), 1 }
   0xe   : > { %s1959_s16 = smul.u32 352, %s2683_s13 }
   0xf   : > { %s1960_s11 = smul.u32 72, %s2683_s13 }
  0x10   : > { %s2066_s21 = scalar_lea.vmem %s2678_s0, %s1959_s16 }
  0x11   : > { %v1618_v5 = vld [vmem:[%s2066_s21 + $0x58] sm:$0xff]  ;;  %v1619_v6 = vld [vmem:[%s2066_s21 + $0x60] sm:$0xff]  ;;  %v1624_v7 = vld [vmem:[%s2066_s21 + $0x88] sm:$0xff]  ;;  %s2610_s15 = scalar_lea.vmem %s2681_s3, %s1960_s11 }
  0x12   : > { %v201_v8 = vpack.c.bf16 %v1619_v6, %v1618_v5  ;;  %v1625_v9 = vld [vmem:[%s2066_s21 + $0x90] sm:$0xff]  ;;  %v1620_v13 = vld [vmem:[%s2066_s21 + $0x68] sm:$0xff]  ;;  %v172_v15 = vld [vmem:[%s2066_s21] sm:$0xff] }
  0x13   : > { %v2076_v11 = vpack.c.bf16 %v1625_v9, %v1624_v7  ;;  %v1621_v14 = vld [vmem:[%s2066_s21 + $0x70] sm:$0xff]  ;;  %v173_v16 = vld [vmem:[%s2066_s21 + $0x8] sm:$0xff]  ;;  %v175_v19 = vld [vmem:[%s2066_s21 + $0x18] sm:$0xff] }
  0x14   : > { %1762 = vmatmul.mubr.msk.bf16.vlgmr.msra.gmra.mrb[0].mxu0 %vm242_vm2, %v201_v8  ;;  %v2086_v17 = vpack.c.bf16 %v173_v16, %v172_v15  ;;  %v174_v18 = vld [vmem:[%s2066_s21 + $0x10] sm:$0xff]  ;;  %v176_v20 = vld [vmem:[%s2066_s21 + $0x20] sm:$0xff]  ;;  %v1025_v21 = vshrl.u32 %v201_v8, 16  ;;  %v1028_v22 = vshll.u32 %v201_v8, 16  ;;  %v202_v23 = vpack.c.bf16 %v1621_v14, %v1620_v13  ;;  %v1626_v24 = vld [vmem:[%s2066_s21 + $0x98] sm:$0xff] }
  0x15   : > { %1774 = vmatmul.mubr.msk.bf16.vlgmr.msra.gmra.mrb[0].mxu1 %vm242_vm2, %v2076_v11  ;;  %1804 = vmatpush3.bf16.msra.mxu0 %v477_v10  ;;  %v1627_v25 = vld [vmem:[%s2066_s21 + $0xa0] sm:$0xff]  ;;  %v2095_v26 = vpack.c.bf16 %v175_v19, %v174_v18  ;;  %v177_v27 = vld [vmem:[%s2066_s21 + $0x28] sm:$0xff]  ;;  %v178_v31 = vld [vmem:[%s2066_s21 + $0x30] sm:$0xff] }
  0x16   : > { %1782 = vmatpush3.bf16.msra.mxu1 %v350_v12  ;;  %1765 = vmatprep.mubr.msk.bf16.mxu0 %vm2016_vm1, %v2015_v1  ;;  %v429_v29 = vshll.u32 %v2086_v17, 16  ;;  %v1032_v32 = vshrl.u32 %v202_v23, 16  ;;  %v2110_v33 = vpack.c.bf16 %v177_v27, %v176_v20  ;;  %v179_v34 = vld [vmem:[%s2066_s21 + $0x38] sm:$0xff]  ;;  %v180_v35 = vld [vmem:[%s2066_s21 + $0x40] sm:$0xff]  ;;  %v181_v36 = vld [vmem:[%s2066_s21 + $0x48] sm:$0xff]  ;;  %v1035_v37 = vshll.u32 %v202_v23, 16 }
  0x17   : > { %1777 = vmatprep.mubr.msk.bf16.mxu1 %vm2016_vm1, %v2015_v1  ;;  %1825 = vmatprep.subr.bf16.mxu1 %v2015_v1  ;;  %v2115_v38 = vpack.c.bf16 %v1627_v25, %v1626_v24  ;;  %v433_v39 = vshll.u32 %v2095_v26, 16  ;;  %v1631_v40 = vld [vmem:[%s2066_s21 + $0xc0] sm:$0xff]  ;;  %v1632_v41 = vld [vmem:[%s2066_s21 + $0xc8] sm:$0xff]  ;;  %v2120_v42 = vrot.slane %v1025_v21, 4  ;;  %v2122_v43 = vrot.slane %v1028_v22, 5  ;;  %v1622_v44 = vld [vmem:[%s2066_s21 + $0x78] sm:$0xff] }
  0x18   : > { %1847 = vmatprep.subr.bf16.mxu0 %v2015_v1  ;;  %v1623_v45 = vld [vmem:[%s2066_s21 + $0x80] sm:$0xff]  ;;  %v427_v48 = vshrl.u32 %v2086_v17, 16  ;;  %v431_v49 = vrot.slane %v429_v29, 1  ;;  %v2133_v50 = vpack.c.bf16 %v179_v34, %v178_v31  ;;  %v2135_v51 = vpack.c.bf16 %v181_v36, %v180_v35  ;;  %v1629_v52 = vld [vmem:[%s2066_s21 + $0xb0] sm:$0xff]  ;;  %v1630_v53 = vld [vmem:[%s2066_s21 + $0xb8] sm:$0xff] }
  0x19   : > { %v2140_v54 = vrot.slane %v1032_v32, 4  ;;  %v437_v55 = vshrl.u32 %v2095_v26, 16  ;;  %v440_v56 = vshll.u32 %v2110_v33, 16  ;;  %v2144_v57 = vpack.c.bf16 %v1632_v41, %v1631_v40  ;;  %v1633_v61 = vld [vmem:[%s2066_s21 + $0xd0] sm:$0xff]  ;;  %v1634_v62 = vld [vmem:[%s2066_s21 + $0xd8] sm:$0xff]  ;;  %v1635_v63 = vld [vmem:[%s2066_s21 + $0xe0] sm:$0xff] }
  0x1a   : > { %v2146_v58 = vrot.slane %v1035_v37, 5  ;;  %v2152_v59 = vpack.c.bf16 %v1623_v45, %v1622_v44  ;;  %v435_v60 = vrot.slane %v433_v39, 1  ;;  %v900_v0 = vrot.slane %v427_v48, 4  ;;  %v1636_v6 = vld [vmem:[%s2066_s21 + $0xe8] sm:$0xff]  ;;  %v1637_v7 = vld [vmem:[%s2066_s21 + $0xf0] sm:$0xff]  ;;  %v1638_v8 = vld [vmem:[%s2066_s21 + $0xf8] sm:$0xff] }
  0x1b   : > { %v903_v2 = vrot.slane %v437_v55, 4  ;;  %v444_v3 = vshrl.u32 %v2110_v33, 16  ;;  %v2160_v4 = vpack.c.bf16 %v1630_v53, %v1629_v52  ;;  %v770_v5 = vshll.u32 %v2144_v57, 16 }
  0x1c   : > { %1766 = vmatmul.mubr.msk.bf16.gmra.mrb[4].mxu0 %vm242_vm2, %v202_v23  ;;  %v432_v9 = vor.u32 %v431_v49, %v427_v48  ;;  %v447_v10 = vshll.u32 %v2133_v50, 16  ;;  %v451_v12 = vshrl.u32 %v2133_v50, 16  ;;  %v454_v13 = vshll.u32 %v2135_v51, 16 }
  0x1d   : > { %1778 = vmatmul.mubr.msk.bf16.gmra.mrb[4].mxu1 %vm242_vm2, %v2115_v38  ;;  %1769 = vmatprep.mubr.msk.bf16.mxu0 %vm2016_vm1, %v2015_v1  ;;  %v439_v14 = vor.u32 %v437_v55, %v435_v60  ;;  %v2169_v15 = vrot.slane %v440_v56, 1  ;;  %v458_v16 = vshrl.u32 %v2135_v51, 16  ;;  %v2172_v18 = vpack.c.bf16 %v1634_v62, %v1633_v61 }
  0x1e   : > { %1783 = vmatprep.mubr.msk.bf16.mxu1 %vm2016_vm1, %v2015_v1  ;;  %v772_v19 = vrot.slane %v770_v5, 1  ;;  %v2174_v20 = vpack.c.bf16 %v1636_v6, %v1635_v63  ;;  %v2176_v21 = vpack.c.bf16 %v1638_v8, %v1637_v7  ;;  %v764_v22 = vshrl.u32 %v2160_v4, 16 }
  0x1f   : > { %v766_v23 = vshll.u32 %v2160_v4, 16  ;;  %v774_v24 = vshrl.u32 %v2144_v57, 16  ;;  %v777_v25 = vshll.u32 %v2172_v18, 16  ;;  %v901_v27 = vrot.slane %v429_v29, 5 }
  0x20   : > { %v904_v28 = vrot.slane %v433_v39, 5  ;;  %v781_v30 = vshrl.u32 %v2172_v18, 16  ;;  %v784_v31 = vshll.u32 %v2174_v20, 16  ;;  %v907_v32 = vrot.slane %v444_v3, 4 }
  0x21   : > { %v768_v34 = vrot.slane %v766_v23, 1  ;;  %v776_v35 = vor.u32 %v774_v24, %v772_v19  ;;  %v779_v36 = vrot.slane %v777_v25, 1  ;;  %v902_v37 = vor.u32 %v901_v27, %v900_v0 }
  0x22   : > { %v905_v29 = vor.u32 %v904_v28, %v903_v2  ;;  %v786_v39 = vrot.slane %v784_v31, 1  ;;  %v908_v40 = vrot.slane %v440_v56, 5  ;;  %v788_v41 = vshrl.u32 %v2174_v20, 16  ;;  %v182_v56 = vld [vmem:[%s2066_s21 + $0x50] sm:$0xff] }
  0x23   : > { %v769_v44 = vor.u32 %v768_v34, %v764_v22  ;;  %v2198_v45 = vsel %vm426_vm4, %v776_v35, %v779_v36  ;;  %v783_v48 = vor.u32 %v781_v30, %v779_v36  ;;  %v791_v49 = vshll.u32 %v2176_v21, 16 }
  0x24   : > { %1770 = vmatmul.mubr.msk.bf16.gmra.mrb[8].mxu0 %vm242_vm2, %v2152_v59  ;;  %v2203_v52 = vsel %vm899_vm3, %v902_v37, %v905_v29  ;;  %v909_v53 = vor.u32 %v908_v40, %v907_v32  ;;  %v790_v55 = vor.u32 %v788_v41, %v786_v39  ;;  %v912_v0 = vrot.slane %v447_v10, 5 }
  0x25   : > { %1784 = vmatmul.mubr.msk.bf16.vlgmr.msra.gmra.mrb[8].mxu1 %vm242_vm2, %v2086_v17  ;;  %1805 = vmatprep.mubr.msk.bf16.mxu0 %vm2016_vm1, %v2015_v1  ;;  %v2209_v61 = vsel %vm426_vm4, %v769_v44, %v772_v19  ;;  %v2212_v62 = vsel %vm426_vm4, %v783_v48, %v786_v39  ;;  %v2214_v63 = vrot.slane %v791_v49, 1  ;;  %v436_v2 = vsel %vm426_vm4, %v432_v9, %v435_v60 }
  0x26   : > { %1826 = vmatpush3.bf16.msra.mxu1 %v578_v46  ;;  %1787 = vmatprep.mubr.msk.bf16.mxu1 %vm2016_vm1, %v2015_v1  ;;  %v911_v46 = vrot.slane %v451_v12, 4  ;;  %v2220_v5 = vsel %vm899_vm3, %v905_v29, %v909_v53  ;;  %v915_v6 = vrot.slane %v458_v16, 4  ;;  %v916_v7 = vrot.slane %v454_v13, 5 }
  0x27   : > { %1869 = vmatprep.subr.bf16.mxu1 %v2015_v1  ;;  %v2228_v8 = vsel %vm426_vm4, %v790_v55, %v2214_v63  ;;  %v2230_v22 = vpack.c.bf16 %v182_v56, %v182_v56  ;;  %v1031_v23 = vor.u32 %v2122_v43, %v2120_v42  ;;  %v443_v60 = vsel %vm426_vm4, %v439_v14, %v2169_v15 }
  0x28   : > { %v913_v19 = vor.u32 %v912_v0, %v911_v46  ;;  %v917_v9 = vor.u32 %v916_v7, %v915_v6  ;;  %v1038_v24 = vor.u32 %v2146_v58, %v2140_v54  ;;  %v1040_v25 = vshrl.u32 %v2152_v59, 16 }
  0x29   : > { %v920_v28 = vshll.u32 %v2230_v22, 16  ;;  %v1043_v30 = vshll.u32 %v2152_v59, 16  ;;  %v1177_v58 = vrot.slane %v2086_v17, 5  ;;  %v1178_v31 = vrot.slane %v2095_v26, 5 }
  0x2a   : > { %v2241_v27 = vsel %vm899_vm3, %v909_v53, %v913_v19  ;;  %v2249_v42 = vsel %vm899_vm3, %v913_v19, %v917_v9  ;;  %v2252_v43 = vsel %vm899_vm3, %v1031_v23, %v1038_v24  ;;  %v1042_v54 = vrot.slane %v1040_v25, 4 }
  0x2b   : > { %v922_v59 = vrot.slane %v920_v28, 5  ;;  %v1045_v14 = vrot.slane %v1043_v30, 5  ;;  %v1051_v32 = vshll.u32 %v2076_v11, 16  ;;  %v1180_v34 = vrot.slane %v2110_v33, 5  ;;  %v1640_v28 = vld [vmem:[%s2066_s21 + $0x110] sm:$0xff]  ;;  %v1641_v30 = vld [vmem:[%s2066_s21 + $0x118] sm:$0xff] }
  0x2c   : > { %1806 = vmatmul.mubr.msk.bf16.vlgmr.msra.gmra.mrb[12].mxu0 %vm242_vm2, %v436_v2  ;;  %v1056_v17 = vshrl.u32 %v2115_v38, 16  ;;  %v1059_v35 = vshll.u32 %v2115_v38, 16  ;;  %v2270_v29 = vsel %vm1176_vm5, %v1177_v58, %v1178_v31  ;;  %v1182_v38 = vrot.slane %v2133_v50, 5  ;;  %v1628_v2 = vld [vmem:[%s2066_s21 + $0xa8] sm:$0xff] }
  0x2d   : > { %1788 = vmatmul.mubr.msk.bf16.gmra.mrb[12].mxu1 %vm242_vm2, %v2095_v26  ;;  %1848 = vmatpush3.bf16.msra.mxu0 %v2128_v47  ;;  %v1048_v47 = vshrl.u32 %v2076_v11, 16  ;;  %v2267_v36 = vsel %vm899_vm3, %v917_v9, %v922_v59  ;;  %v1046_v37 = vor.u32 %v1045_v14, %v1042_v54  ;;  %v1053_v39 = vrot.slane %v1051_v32, 5  ;;  %v1642_v54 = vld [vmem:[%s2066_s21 + $0x120] sm:$0xff]  ;;  %v1644_v59 = vld [vmem:[%s2066_s21 + $0x130] sm:$0xff]  ;;  %v1647_v32 = vld [vmem:[%s2066_s21 + $0x148] sm:$0xff] }
  0x2e   : > { %1791 = vmatprep.mubr.msk.bf16.mxu1 %vm2016_vm1, %v2015_v1  ;;  %1809 = vmatprep.mubr.msk.bf16.mxu0 %vm2016_vm1, %v2015_v1  ;;  %v2273_v40 = vsel %vm1176_vm5, %v1178_v31, %v1180_v34  ;;  %v1058_v11 = vrot.slane %v1056_v17, 4  ;;  %v1061_v41 = vrot.slane %v1059_v35, 5  ;;  %v2281_v53 = vsel %vm1176_vm5, %v1180_v34, %v1182_v38  ;;  %v1646_v31 = vld [vmem:[%s2066_s21 + $0x140] sm:$0xff]  ;;  %v1648_v34 = vld [vmem:[%s2066_s21 + $0x150] sm:$0xff]  ;;  %v1690_v17 = vld [vmem:[%s2679_s1 + $0x1c] sm:$0xf] }
  0x2f   : > { %1891 = vmatprep.subr.bf16.mxu0 %v2015_v1  ;;  %v1050_v26 = vrot.slane %v1048_v47, 4  ;;  %v2276_v44 = vsel %vm899_vm3, %v1038_v24, %v1046_v37  ;;  %v446_v55 = vor.u32 %v444_v3, %v2169_v15  ;;  %v449_v46 = vrot.slane %v447_v10, 1 }
  0x30   : > { %v1062_v49 = vor.u32 %v1061_v41, %v1058_v11  ;;  %v206_v6 = vpack.c.bf16 %v1628_v2, %v1628_v2  ;;  %v1186_v9 = vrot.slane %v2230_v22, 5  ;;  %v1639_v22 = vld [vmem:[%s2066_s21 + $0x108] sm:$0xff]  ;;  %v235_v58 = vpack.c.bf16 %v1642_v54, %v1641_v30 }
  0x31   : > { %v1054_v48 = vor.u32 %v1053_v39, %v1050_v26  ;;  %v450_v19 = vsel %vm426_vm4, %v446_v55, %v449_v46  ;;  %v453_v15 = vor.u32 %v451_v12, %v449_v46  ;;  %v1678_v12 = vld [vmem:[%s2679_s1 + $0x14] sm:$0xf]  ;;  %v1085_v35 = vsel %vm258_vm0, %v1690_v17, 0 }
  0x32   : > { %v1065_v7 = vshll.u32 %v206_v6, 16 }
  0x33   : > { %v2293_v56 = vsel %vm899_vm3, %v1046_v37, %v1054_v48  ;;  %v2296_v0 = vsel %vm899_vm3, %v1054_v48, %v1062_v49  ;;  %v1696_v37 = vld [vmem:[%s2679_s1 + $0x20] sm:$0xf] }
  0x34   : > { %1810 = vmatmul.mubr.msk.bf16.gmra.mrb[16].mxu0 %vm242_vm2, %v443_v60  ;;  %v1067_v23 = vrot.slane %v1065_v7, 5  ;;  %v456_v60 = vrot.slane %v454_v13, 1  ;;  %v814_v13 = vsel %vm258_vm0, %v1678_v12, 0  ;;  %v1204_v26 = vsel %vm258_vm0, %v1696_v37, 0 }
  0x35   : > { %1792 = vmatmul.mubr.msk.bf16.gmra.mrb[16].mxu1 %vm242_vm2, %v2110_v33  ;;  %1813 = vmatprep.mubr.msk.bf16.mxu0 %vm2016_vm1, %v2015_v1  ;;  %v1184_v33 = vrot.slane %v2135_v51, 5 }
  0x36   : > { %1795 = vmatprep.mubr.msk.bf16.mxu1 %vm2016_vm1, %v2015_v1  ;;  %v2305_v3 = vsel %vm899_vm3, %v1062_v49, %v1067_v23  ;;  %v457_v25 = vsel %vm426_vm4, %v453_v15, %v456_v60 }
  0x37   : > { %v2308_v10 = vsel %vm1176_vm5, %v1182_v38, %v1184_v33  ;;  %v2322_v24 = vsel %vm1176_vm5, %v1184_v33, %v1186_v9 }
  0x3c   : > { %1814 = vmatmul.mubr.msk.bf16.gmra.mrb[20].mxu0 %vm242_vm2, %v450_v19 }
  0x3d   : > { %1796 = vmatmul.mubr.msk.bf16.gmra.mrb[20].mxu1 %vm242_vm2, %v2133_v50  ;;  %1817 = vmatprep.mubr.msk.bf16.mxu0 %vm2016_vm1, %v2015_v1  ;;  %v460_v50 = vor.u32 %v458_v16, %v456_v60  ;;  %v234_v16 = vpack.c.bf16 %v1640_v28, %v1639_v22 }
  0x3e   : > { %1799 = vmatprep.mubr.msk.bf16.mxu1 %vm2016_vm1, %v2015_v1 }
  0x44   : > { %1818 = vmatmul.mubr.msk.bf16.gmra.mrb[24].mxu0 %vm242_vm2, %v457_v25 }
  0x45   : > { %1800 = vmatmul.mubr.msk.bf16.gmra.mrb[24].mxu1 %vm242_vm2, %v2135_v51  ;;  %1821 = vmatprep.mubr.msk.bf16.mxu0 %vm2016_vm1, %v2015_v1  ;;  %v1684_v51 = vld [vmem:[%s2679_s1 + $0x18] sm:$0xf] }
  0x46   : > { %1827 = vmatprep.mubr.msk.bf16.mxu1 %vm2016_vm1, %v2015_v1 }
  0x4c   : > { %1822 = vmatmul.mubr.msk.bf16.gmra.mrb[28].mxu0 %vm242_vm2, %v460_v50 }
  0x4d   : > { %1828 = vmatmul.mubr.msk.bf16.vlgmr.msra.gmra.mrb[28].mxu1 %vm242_vm2, %v2160_v4  ;;  %1849 = vmatprep.mubr.msk.bf16.mxu0 %vm2016_vm1, %v2015_v1  ;;  %v940_v4 = vsel %vm258_vm0, %v1684_v51, 0 }
  0x4e   : > { %1870 = vmatpush3.bf16.msra.mxu1 %v814_v13  ;;  %1831 = vmatprep.mubr.msk.bf16.mxu1 %vm2016_vm1, %v2015_v1 }
  0x4f   : > { %1913 = vmatprep.subr.bf16.mxu1 %v2015_v1 }
  0x54   : > { %1850 = vmatmul.mubr.msk.bf16.vlgmr.msra.gmra.mrb[32].mxu0 %vm242_vm2, %v234_v16 }
  0x55   : > { %1832 = vmatmul.mubr.msk.bf16.gmra.mrb[32].mxu1 %vm242_vm2, %v2144_v57  ;;  %1892 = vmatpush3.bf16.msra.mxu0 %v940_v4  ;;  %v1643_v57 = vld [vmem:[%s2066_s21 + $0x128] sm:$0xff] }
  0x56   : > { %1835 = vmatprep.mubr.msk.bf16.mxu1 %vm2016_vm1, %v2015_v1  ;;  %1853 = vmatprep.mubr.msk.bf16.mxu0 %vm2016_vm1, %v2015_v1  ;;  %v236_v14 = vpack.c.bf16 %v1644_v59, %v1643_v57 }
  0x57   : > { %1935 = vmatprep.subr.bf16.mxu0 %v2015_v1 }
  0x5c   : > { %1854 = vmatmul.mubr.msk.bf16.gmra.mrb[36].mxu0 %vm242_vm2, %v235_v58 }
  0x5d   : > { %1836 = vmatmul.mubr.msk.bf16.gmra.mrb[36].mxu1 %vm242_vm2, %v2172_v18  ;;  %1857 = vmatprep.mubr.msk.bf16.mxu0 %vm2016_vm1, %v2015_v1  ;;  %v1645_v18 = vld [vmem:[%s2066_s21 + $0x138] sm:$0xff] }
  0x5e   : > { %1839 = vmatprep.mubr.msk.bf16.mxu1 %vm2016_vm1, %v2015_v1  ;;  %v237_v47 = vpack.c.bf16 %v1646_v31, %v1645_v18 }
  0x64   : > { %1858 = vmatmul.mubr.msk.bf16.gmra.mrb[40].mxu0 %vm242_vm2, %v236_v14 }
  0x65   : > { %1840 = vmatmul.mubr.msk.bf16.gmra.mrb[40].mxu1 %vm242_vm2, %v2174_v20  ;;  %1861 = vmatprep.mubr.msk.bf16.mxu0 %vm2016_vm1, %v2015_v1  ;;  %v238_v20 = vpack.c.bf16 %v1648_v34, %v1647_v32 }
  0x66   : > { %1843 = vmatprep.mubr.msk.bf16.mxu1 %vm2016_vm1, %v2015_v1 }
  0x6c   : > { %1862 = vmatmul.mubr.msk.bf16.gmra.mrb[44].mxu0 %vm242_vm2, %v237_v47 }
  0x6d   : > { %1844 = vmatmul.mubr.msk.bf16.gmra.mrb[44].mxu1 %vm242_vm2, %v2176_v21  ;;  %1865 = vmatprep.mubr.msk.bf16.mxu0 %vm2016_vm1, %v2015_v1 }
  0x6e   : > { %1871 = vmatprep.mubr.msk.bf16.mxu1 %vm2016_vm1, %v2015_v1 }
  0x74   : > { %1866 = vmatmul.mubr.msk.bf16.gmra.mrb[48].mxu0 %vm242_vm2, %v238_v20 }
  0x75   : > { %1872 = vmatmul.mubr.msk.bf16.vlgmr.msra.gmra.mrb[48].mxu1 %vm242_vm2, %v2209_v61  ;;  %1893 = vmatprep.mubr.msk.bf16.mxu0 %vm2016_vm1, %v2015_v1 }
  0x76   : > { %1914 = vmatpush3.bf16.msra.mxu1 %v1085_v35  ;;  %1875 = vmatprep.mubr.msk.bf16.mxu1 %vm2016_vm1, %v2015_v1 }
  0x7c   : > { %1894 = vmatmul.mubr.msk.bf16.vlgmr.msra.gmra.mrb[52].mxu0 %vm242_vm2, %v2203_v52 }
  0x7d   : > { %1876 = vmatmul.mubr.msk.bf16.gmra.mrb[52].mxu1 %vm242_vm2, %v2198_v45  ;;  %1936 = vmatpush3.bf16.msra.mxu0 %v1204_v26  ;;  %v795_v45 = vshrl.u32 %v2176_v21, 16 }
  0x7e   : > { %1879 = vmatprep.mubr.msk.bf16.mxu1 %vm2016_vm1, %v2015_v1  ;;  %1897 = vmatprep.mubr.msk.bf16.mxu0 %vm2016_vm1, %v2015_v1 }
  0x7f   : > { %v797_v52 = vor.u32 %v795_v45, %v2214_v63 }
  0x84   : > { %1898 = vmatmul.mubr.msk.bf16.gmra.mrb[56].mxu0 %vm242_vm2, %v2220_v5 }
  0x85   : > { %1880 = vmatmul.mubr.msk.bf16.gmra.mrb[56].mxu1 %vm242_vm2, %v2212_v62  ;;  %1901 = vmatprep.mubr.msk.bf16.mxu0 %vm2016_vm1, %v2015_v1 }
  0x86   : > { %1883 = vmatprep.mubr.msk.bf16.mxu1 %vm2016_vm1, %v2015_v1 }
  0x8c   : > { %1902 = vmatmul.mubr.msk.bf16.gmra.mrb[60].mxu0 %vm242_vm2, %v2241_v27 }
  0x8d   : > { %1884 = vmatmul.mubr.msk.bf16.gmra.mrb[60].mxu1 %vm242_vm2, %v2228_v8  ;;  %1905 = vmatprep.mubr.msk.bf16.mxu0 %vm2016_vm1, %v2015_v1 }
  0x8e   : > { %1887 = vmatprep.mubr.msk.bf16.mxu1 %vm2016_vm1, %v2015_v1 }
  0x94   : > { %1906 = vmatmul.mubr.msk.bf16.gmra.mrb[64].mxu0 %vm242_vm2, %v2249_v42 }
  0x95   : > { %1888 = vmatmul.mubr.msk.bf16.gmra.mrb[64].mxu1 %vm242_vm2, %v797_v52  ;;  %1909 = vmatprep.mubr.msk.bf16.mxu0 %vm2016_vm1, %v2015_v1 }
  0x96   : > { %1915 = vmatprep.mubr.msk.bf16.mxu1 %vm2016_vm1, %v2015_v1 }
  0x9c   : > { %1910 = vmatmul.mubr.msk.bf16.gmra.mrb[68].mxu0 %vm242_vm2, %v2267_v36 }
  0x9d   : > { %1916 = vmatmul.mubr.msk.bf16.vlgmr.msra.gmra.mrb[68].mxu1 %vm242_vm2, %v2252_v43  ;;  %1937 = vmatprep.mubr.msk.bf16.mxu0 %vm2016_vm1, %v2015_v1 }
  0x9e   : > { %1919 = vmatprep.mubr.msk.bf16.mxu1 %vm2016_vm1, %v2015_v1 }
  0xa4   : > { %1938 = vmatmul.mubr.msk.bf16.vlgmr.msra.gmra.mrb[72].mxu0 %vm242_vm2, %v2270_v29 }
  0xa5   : > { %1920 = vmatmul.mubr.msk.bf16.gmra.mrb[72].mxu1 %vm242_vm2, %v2276_v44  ;;  %1941 = vmatprep.mubr.msk.bf16.mxu0 %vm2016_vm1, %v2015_v1 }
  0xa6   : > { %1923 = vmatprep.mubr.msk.bf16.mxu1 %vm2016_vm1, %v2015_v1 }
  0xac   : > { %1942 = vmatmul.mubr.msk.bf16.gmra.mrb[76].mxu0 %vm242_vm2, %v2273_v40 }
  0xad   : > { %1924 = vmatmul.mubr.msk.bf16.gmra.mrb[76].mxu1 %vm242_vm2, %v2293_v56  ;;  %1945 = vmatprep.mubr.msk.bf16.mxu0 %vm2016_vm1, %v2015_v1 }
  0xae   : > { %1927 = vmatprep.mubr.msk.bf16.mxu1 %vm2016_vm1, %v2015_v1 }
  0xb4   : > { %1946 = vmatmul.mubr.msk.bf16.gmra.mrb[80].mxu0 %vm242_vm2, %v2281_v53 }
  0xb5   : > { %1928 = vmatmul.mubr.msk.bf16.gmra.mrb[80].mxu1 %vm242_vm2, %v2296_v0  ;;  %1949 = vmatprep.mubr.msk.bf16.mxu0 %vm2016_vm1, %v2015_v1 }
  0xb6   : > { %1931 = vmatprep.mubr.msk.bf16.mxu1 %vm2016_vm1, %v2015_v1 }
  0xbc   : > { %1950 = vmatmul.mubr.msk.bf16.gmra.mrb[84].mxu0 %vm242_vm2, %v2308_v10 }
  0xbd   : > { %1932 = vmatmul.mubr.msk.bf16.gmra.mrb[84].mxu1 %vm242_vm2, %v2305_v3  ;;  %1953 = vmatprep.mubr.msk.bf16.mxu0 %vm2016_vm1, %v2015_v1 }
  0xc4   : > { %1954 = vmatmul.mubr.msk.bf16.gmra.mrb[88].mxu0 %vm242_vm2, %v2322_v24 }
  0xe7   : > { %v296_v21 = vpop.f32.mrb[0].mxu0 }
  0xe8   : > { %v1763_v61 = vpop.f32.mrb[1].mxu0  ;;  %v320_v62 = vpop.f32.mrb[0].mxu1 }
  0xe9   : > { %v299_v63 = vpop.f32.mrb[2].mxu0  ;;  %v1775_v5 = vpop.f32.mrb[1].mxu1 }
  0xea   : > { %v1764_v8 = vpop.f32.mrb[3].mxu0  ;;  %v323_v27 = vpop.f32.mrb[2].mxu1 }
  0xeb   : > { %v1776_v42 = vpop.f32.mrb[3].mxu1 }
  0xef   : > { %v304_v43 = vpop.f32.mrb[4].mxu0 }
  0xf0   : > { %v1767_v36 = vpop.f32.mrb[5].mxu0  ;;  %v328_v29 = vpop.f32.mrb[4].mxu1 }
  0xf1   : > { %v307_v39 = vpop.f32.mrb[6].mxu0  ;;  %v1779_v40 = vpop.f32.mrb[5].mxu1 }
  0xf2   : > { %v1768_v11 = vpop.f32.mrb[7].mxu0  ;;  %v331_v41 = vpop.f32.mrb[6].mxu1 }
  0xf3   : > { %v1780_v44 = vpop.f32.mrb[7].mxu1 }
  0xf7   : > { %v312_v1 = vpop.f32.mrb[8].mxu0 }
  0xf8   : > { %v386_v38 = vpop.f32.mrb[8].mxu1  ;;  %v1771_v48 = vpop.f32.mrb[9].mxu0 }
  0xf9   : > { %v387_v49 = vadd.f32 %v386_v38, %v296_v21  ;;  %v1785_v53 = vpop.f32.mrb[9].mxu1  ;;  %v315_v55 = vpop.f32.mrb[10].mxu0 }
  0xfa   : > { %v389_v46 = vpop.f32.mrb[10].mxu1  ;;  %v1772_v56 = vpop.f32.mrb[11].mxu0 }
  0xfb   : > { %v390_v0 = vadd.f32 %v389_v46, %v299_v63  ;;  %v1786_v2 = vpop.f32.mrb[11].mxu1 }
  0xff   : > { %v513_v6 = vpop.f32.mrb[12].mxu0 }
 0x100   : > { %v394_v7 = vpop.f32.mrb[12].mxu1  ;;  %v551_v19 = vadd.f32 %v513_v6, %v387_v49  ;;  %v1807_v23 = vpop.f32.mrb[13].mxu0 }
 0x101   : > { %v395_v33 = vadd.f32 %v394_v7, %v304_v43  ;;  %v1789_v3 = vpop.f32.mrb[13].mxu1  ;;  %v516_v10 = vpop.f32.mrb[14].mxu0 }
 0x102   : > { %v397_v15 = vpop.f32.mrb[14].mxu1  ;;  %v552_v60 = vadd.f32 %v516_v10, %v390_v0  ;;  %v1808_v9 = vpop.f32.mrb[15].mxu0 }
 0x103   : > { %v398_v24 = vadd.f32 %v397_v15, %v307_v39  ;;  %v1790_v25 = vpop.f32.mrb[15].mxu1 }
 0x107   : > { %v521_v50 = vpop.f32.mrb[16].mxu0 }
 0x108   : > { %v402_v12 = vpop.f32.mrb[16].mxu1  ;;  %v553_v13 = vadd.f32 %v521_v50, %v395_v33  ;;  %v1811_v22 = vpop.f32.mrb[17].mxu0 }
 0x109   : > { %v403_v28 = vadd.f32 %v402_v12, %v312_v1  ;;  %v1793_v51 = vpop.f32.mrb[17].mxu1  ;;  %v524_v16 = vpop.f32.mrb[18].mxu0 }
 0x10a   : > { %v405_v4 = vpop.f32.mrb[18].mxu1  ;;  %v554_v30 = vadd.f32 %v524_v16, %v398_v24  ;;  %v1812_v54 = vpop.f32.mrb[19].mxu0 }
 0x10b   : > { %v406_v58 = vadd.f32 %v405_v4, %v315_v55  ;;  %v1794_v57 = vpop.f32.mrb[19].mxu1 }
 0x10f   : > { %v529_v59 = vpop.f32.mrb[20].mxu0 }
 0x110   : > { %v410_v14 = vpop.f32.mrb[20].mxu1  ;;  %v555_v18 = vadd.f32 %v529_v59, %v403_v28  ;;  %v1815_v31 = vpop.f32.mrb[21].mxu0 }
 0x111   : > { %v411_v47 = vadd.f32 %v410_v14, %v320_v62  ;;  %v1797_v32 = vpop.f32.mrb[21].mxu1  ;;  %v532_v34 = vpop.f32.mrb[22].mxu0 }
 0x112   : > { %v413_v20 = vpop.f32.mrb[22].mxu1  ;;  %v556_v17 = vadd.f32 %v532_v34, %v406_v58  ;;  %v1816_v35 = vpop.f32.mrb[23].mxu0 }
 0x113   : > { %v414_v37 = vadd.f32 %v413_v20, %v323_v27  ;;  %v1798_v26 = vpop.f32.mrb[23].mxu1 }
 0x117   : > { %v537_v45 = vpop.f32.mrb[24].mxu0 }
 0x118   : > { %v418_v52 = vpop.f32.mrb[24].mxu1  ;;  %v557_v21 = vadd.f32 %v537_v45, %v411_v47  ;;  %v1819_v61 = vpop.f32.mrb[25].mxu0 }
 0x119   : > { %v419_v63 = vadd.f32 %v418_v52, %v328_v29  ;;  %v540_v5 = vpop.f32.mrb[26].mxu0  ;;  %v1801_v8 = vpop.f32.mrb[25].mxu1 }
 0x11a   : > { %v558_v42 = vadd.f32 %v540_v5, %v414_v37  ;;  %v1820_v43 = vpop.f32.mrb[27].mxu0  ;;  %v421_v36 = vpop.f32.mrb[26].mxu1 }
 0x11b   : > { %v1802_v39 = vpop.f32.mrb[27].mxu1 }
 0x11f   : > { %v545_v40 = vpop.f32.mrb[28].mxu0 }
 0x120   : > { %v559_v62 = vadd.f32 %v545_v40, %v419_v63  ;;  %v614_v11 = vpop.f32.mrb[28].mxu1  ;;  %v1823_v41 = vpop.f32.mrb[29].mxu0 }
 0x121   : > { %v652_v44 = vadd.f32 %v614_v11, %v551_v19  ;;  %v1829_v1 = vpop.f32.mrb[29].mxu1  ;;  %v548_v38 = vpop.f32.mrb[30].mxu0 }
 0x122   : > { %v617_v27 = vpop.f32.mrb[30].mxu1  ;;  %v1824_v48 = vpop.f32.mrb[31].mxu0 }
 0x123   : > { %v653_v49 = vadd.f32 %v617_v27, %v552_v60  ;;  %v1830_v53 = vpop.f32.mrb[31].mxu1 }
 0x127   : > { %v715_v55 = vpop.f32.mrb[32].mxu0 }
 0x128   : > { %v622_v46 = vpop.f32.mrb[32].mxu1  ;;  %v753_v29 = vadd.f32 %v715_v55, %v652_v44  ;;  %v1851_v56 = vpop.f32.mrb[33].mxu0 }
 0x129   : > { %v654_v0 = vadd.f32 %v622_v46, %v553_v13  ;;  %v1833_v2 = vpop.f32.mrb[33].mxu1  ;;  %v718_v6 = vpop.f32.mrb[34].mxu0 }
 0x12a   : > { %v625_v7 = vpop.f32.mrb[34].mxu1  ;;  %v754_v23 = vadd.f32 %v718_v6, %v653_v49  ;;  %v1852_v33 = vpop.f32.mrb[35].mxu0 }
 0x12b   : > { %v655_v3 = vadd.f32 %v625_v7, %v554_v30  ;;  %v1834_v10 = vpop.f32.mrb[35].mxu1 }
 0x12f   : > { %v723_v15 = vpop.f32.mrb[36].mxu0 }
 0x130   : > { %v630_v19 = vpop.f32.mrb[36].mxu1  ;;  %v755_v9 = vadd.f32 %v723_v15, %v654_v0  ;;  %v1855_v24 = vpop.f32.mrb[37].mxu0 }
 0x131   : > { %v656_v25 = vadd.f32 %v630_v19, %v555_v18  ;;  %v1837_v50 = vpop.f32.mrb[37].mxu1  ;;  %v726_v60 = vpop.f32.mrb[38].mxu0 }
 0x132   : > { %v633_v12 = vpop.f32.mrb[38].mxu1  ;;  %v756_v22 = vadd.f32 %v726_v60, %v655_v3  ;;  %v1856_v28 = vpop.f32.mrb[39].mxu0 }
 0x133   : > { %v657_v51 = vadd.f32 %v633_v12, %v556_v17  ;;  %v1838_v16 = vpop.f32.mrb[39].mxu1 }
 0x137   : > { %v731_v13 = vpop.f32.mrb[40].mxu0 }
 0x138   : > { %v638_v4 = vpop.f32.mrb[40].mxu1  ;;  %v757_v54 = vadd.f32 %v731_v13, %v656_v25  ;;  %v1859_v58 = vpop.f32.mrb[41].mxu0 }
 0x139   : > { %v658_v57 = vadd.f32 %v638_v4, %v557_v21  ;;  %v1841_v59 = vpop.f32.mrb[41].mxu1  ;;  %v734_v30 = vpop.f32.mrb[42].mxu0 }
 0x13a   : > { %v641_v14 = vpop.f32.mrb[42].mxu1  ;;  %v758_v31 = vadd.f32 %v734_v30, %v657_v51  ;;  %v1860_v47 = vpop.f32.mrb[43].mxu0 }
 0x13b   : > { %v659_v32 = vadd.f32 %v641_v14, %v558_v42  ;;  %v1842_v34 = vpop.f32.mrb[43].mxu1 }
 0x13f   : > { %v739_v18 = vpop.f32.mrb[44].mxu0 }
 0x140   : > { %v646_v20 = vpop.f32.mrb[44].mxu1  ;;  %v759_v35 = vadd.f32 %v739_v18, %v658_v57  ;;  %v1863_v37 = vpop.f32.mrb[45].mxu0 }
 0x141   : > { %v660_v26 = vadd.f32 %v646_v20, %v559_v62  ;;  %v742_v45 = vpop.f32.mrb[46].mxu0  ;;  %v1845_v17 = vpop.f32.mrb[45].mxu1 }
 0x142   : > { %v760_v52 = vadd.f32 %v742_v45, %v659_v32  ;;  %v1864_v61 = vpop.f32.mrb[47].mxu0  ;;  %v649_v63 = vpop.f32.mrb[46].mxu1 }
 0x143   : > { %v1846_v5 = vpop.f32.mrb[47].mxu1 }
 0x147   : > { %v747_v8 = vpop.f32.mrb[48].mxu0 }
 0x148   : > { %v761_v21 = vadd.f32 %v747_v8, %v660_v26  ;;  %v850_v43 = vpop.f32.mrb[48].mxu1  ;;  %v1867_v36 = vpop.f32.mrb[49].mxu0 }
 0x149   : > { %v888_v39 = vadd.f32 %v850_v43, %v753_v29  ;;  %v1873_v40 = vpop.f32.mrb[49].mxu1  ;;  %v750_v11 = vpop.f32.mrb[50].mxu0 }
 0x14a   : > { %v853_v42 = vpop.f32.mrb[50].mxu1  ;;  %v1868_v41 = vpop.f32.mrb[51].mxu0  ;;  %v2488_v11 = vld [vmem:[%s2680_s2] ss:$0 sm:$0xff] }
 0x14b   : > { %v889_v44 = vadd.f32 %v853_v42, %v754_v23  ;;  %v1874_v1 = vpop.f32.mrb[51].mxu1 }
 0x14f   : > { %v976_v38 = vpop.f32.mrb[52].mxu0 }
 0x150   : > { %v858_v27 = vpop.f32.mrb[52].mxu1  ;;  %v1014_v62 = vadd.f32 %v976_v38, %v888_v39  ;;  %v1895_v48 = vpop.f32.mrb[53].mxu0 }
 0x151   : > { %v890_v49 = vadd.f32 %v858_v27, %v755_v9  ;;  %v1877_v53 = vpop.f32.mrb[53].mxu1  ;;  %v979_v55 = vpop.f32.mrb[54].mxu0 }
 0x152   : > { %v861_v46 = vpop.f32.mrb[54].mxu1  ;;  %v1015_v56 = vadd.f32 %v979_v55, %v889_v44  ;;  %v1896_v0 = vpop.f32.mrb[55].mxu0 }
 0x153   : > { %v891_v2 = vadd.f32 %v861_v46, %v756_v22  ;;  %v1878_v6 = vpop.f32.mrb[55].mxu1 }
 0x157   : > { %v984_v7 = vpop.f32.mrb[56].mxu0 }
 0x158   : > { %v866_v29 = vpop.f32.mrb[56].mxu1  ;;  %v1016_v33 = vadd.f32 %v984_v7, %v890_v49  ;;  %v1899_v3 = vpop.f32.mrb[57].mxu0 }
 0x159   : > { %v892_v10 = vadd.f32 %v866_v29, %v757_v54  ;;  %v1881_v15 = vpop.f32.mrb[57].mxu1  ;;  %v987_v23 = vpop.f32.mrb[58].mxu0 }
 0x15a   : > { %v869_v19 = vpop.f32.mrb[58].mxu1  ;;  %v1017_v24 = vadd.f32 %v987_v23, %v891_v2  ;;  %v1900_v25 = vpop.f32.mrb[59].mxu0 }
 0x15b   : > { %v893_v50 = vadd.f32 %v869_v19, %v758_v31  ;;  %v1882_v60 = vpop.f32.mrb[59].mxu1 }
 0x15f   : > { %v992_v9 = vpop.f32.mrb[60].mxu0 }
 0x160   : > { %v874_v12 = vpop.f32.mrb[60].mxu1  ;;  %v1018_v28 = vadd.f32 %v992_v9, %v892_v10  ;;  %v1903_v51 = vpop.f32.mrb[61].mxu0 }
 0x161   : > { %v894_v16 = vadd.f32 %v874_v12, %v759_v35  ;;  %v1885_v13 = vpop.f32.mrb[61].mxu1  ;;  %v995_v22 = vpop.f32.mrb[62].mxu0 }
 0x162   : > { %v877_v4 = vpop.f32.mrb[62].mxu1  ;;  %v2477_v58 = vadd.f32 %v995_v22, %v893_v50  ;;  %v1904_v57 = vpop.f32.mrb[63].mxu0 }
 0x163   : > { %v895_v59 = vadd.f32 %v877_v4, %v760_v52  ;;  %v1886_v54 = vpop.f32.mrb[63].mxu1 }
 0x167   : > { %v1000_v30 = vpop.f32.mrb[64].mxu0 }
 0x168   : > { %v882_v14 = vpop.f32.mrb[64].mxu1  ;;  %v2479_v47 = vadd.f32 %v1000_v30, %v894_v16  ;;  %v1907_v32 = vpop.f32.mrb[65].mxu0 }
 0x169   : > { %v896_v31 = vadd.f32 %v882_v14, %v761_v21  ;;  %v1003_v34 = vpop.f32.mrb[66].mxu0  ;;  %v1889_v18 = vpop.f32.mrb[65].mxu1 }
 0x16a   : > { %v2481_v20 = vadd.f32 %v1003_v34, %v895_v59  ;;  %v1908_v37 = vpop.f32.mrb[67].mxu0  ;;  %v885_v35 = vpop.f32.mrb[66].mxu1 }
 0x16b   : > { %v1890_v26 = vpop.f32.mrb[67].mxu1 }
 0x16f   : > { %v1008_v45 = vpop.f32.mrb[68].mxu0 }
 0x170   : > { %v2483_v17 = vadd.f32 %v1008_v45, %v896_v31  ;;  %v1121_v61 = vpop.f32.mrb[68].mxu1  ;;  %v1911_v63 = vpop.f32.mrb[69].mxu0 }
 0x171   : > { %v1159_v52 = vadd.f32 %v1121_v61, %v1014_v62  ;;  %v1917_v5 = vpop.f32.mrb[69].mxu1  ;;  %v1011_v8 = vpop.f32.mrb[70].mxu0 }
 0x172   : > { %v1124_v43 = vpop.f32.mrb[70].mxu1  ;;  %v1912_v36 = vpop.f32.mrb[71].mxu0 }
 0x173   : > { %v1160_v39 = vadd.f32 %v1124_v43, %v1015_v56  ;;  %v1918_v40 = vpop.f32.mrb[71].mxu1 }
 0x177   : > { %v1240_v21 = vpop.f32.mrb[72].mxu0 }
 0x178   : > { %v1129_v42 = vpop.f32.mrb[72].mxu1  ;;  %v1278_v41 = vadd.f32 %v1240_v21, %v1159_v52  ;;  %v1939_v44 = vpop.f32.mrb[73].mxu0 }
 0x179   : > { %v1161_v1 = vadd.f32 %v1129_v42, %v1016_v33  ;;  %v1921_v38 = vpop.f32.mrb[73].mxu1  ;;  %v1243_v27 = vpop.f32.mrb[74].mxu0 }
 0x17a   : > { %v2491_v62 = vadd.f32 %v2488_v11, %v1278_v41  ;;  %v1132_v48 = vpop.f32.mrb[74].mxu1  ;;  %v1279_v49 = vadd.f32 %v1243_v27, %v1160_v39  ;;  %v1940_v53 = vpop.f32.mrb[75].mxu0 }
 0x17b   : > { %v1162_v55 = vadd.f32 %v1132_v48, %v1017_v24  ;;  %v1922_v46 = vpop.f32.mrb[75].mxu1 }
 0x17c   : > { %v2494_v56 = vmul.f32 0.70710677, %v2491_v62  ;;  %v2497_v0 = vadd.f32 %v2488_v11, %v1279_v49 }
 0x17e   : > { %v1321_v2 = vand.u32 2147483647, %v2494_v56  ;;  %v2501_v6 = vmul.f32 0.70710677, %v2497_v0  ;;  %vm1501_vm6 = vcmp.ge.f32.partialorder %v2494_v56, 0.0 }
 0x17f   : > { %v1248_v7 = vpop.f32.mrb[76].mxu0 }
 0x180   : > { %v1330_v29 = vmul.f32 0.3275911, %v1321_v2  ;;  %v1322_v33 = vand.u32 2147483647, %v2501_v6  ;;  %v1137_v3 = vpop.f32.mrb[76].mxu1  ;;  %v1280_v10 = vadd.f32 %v1248_v7, %v1161_v1  ;;  %v1943_v15 = vpop.f32.mrb[77].mxu0 }
 0x181   : > { %v1925_v24 = vpop.f32.mrb[77].mxu1  ;;  %v1251_v25 = vpop.f32.mrb[78].mxu0  ;;  %v1163_v50 = vadd.f32 %v1137_v3, %v1018_v28  ;;  %v1447_v59 = vsub.f32 0.0, %v1321_v2  ;;  %vm1502_vm8 = vcmp.ge.f32.partialorder %v2501_v6, 0.0 }
 0x182   : > { %v1339_v23 = vadd.f32 1.0, %v1330_v29  ;;  %v1331_v19 = vmul.f32 0.3275911, %v1322_v33  ;;  %v2505_v60 = vadd.f32 %v2488_v11, %v1280_v10  ;;  %v1140_v9 = vpop.f32.mrb[78].mxu1  ;;  %v1281_v12 = vadd.f32 %v1251_v25, %v1162_v55  ;;  %v1944_v51 = vpop.f32.mrb[79].mxu0 }
 0x183   : > { %v1926_v13 = vpop.f32.mrb[79].mxu1  ;;  %v1164_v4 = vadd.f32 %v1140_v9, %v2477_v58  ;;  %v1448_v30 = vsub.f32 0.0, %v1322_v33  ;;  %v1456_v26 = vmul.f32 %v1447_v59, %v1321_v2  ;;  %v2547_v59 = vmul.f32 0.5, %v2497_v0 }
 0x184   : > { %1971 = vrcp.f32 %v1339_v23  ;;  %v1340_v16 = vadd.f32 1.0, %v1331_v19  ;;  %v2508_v22 = vmul.f32 0.70710677, %v2505_v60  ;;  %v2512_v57 = vadd.f32 %v2488_v11, %v1281_v12 }
 0x185   : > { %v1457_v39 = vmul.f32 %v1448_v30, %v1322_v33  ;;  %v1465_v44 = vmul.f32 1.442695, %v1456_v26 }
 0x186   : > { %1973 = vrcp.f32 %v1340_v16  ;;  %v1323_v28 = vand.u32 2147483647, %v2508_v22  ;;  %v2516_v14 = vmul.f32 0.70710677, %v2512_v57  ;;  %vm1503_vm9 = vcmp.ge.f32.partialorder %v2508_v22, 0.0 }
 0x187   : > { %v1256_v54 = vpop.f32.mrb[80].mxu0  ;;  %v1467_v55 = vmul.f32 1.442695, %v1457_v39  ;;  %v2564_v39 = vmul.f32 0.5, %v2505_v60 }
 0x188   : > { %v1145_v32 = vpop.f32.mrb[80].mxu1  ;;  %v1282_v31 = vadd.f32 %v1256_v54, %v1163_v50  ;;  %v1947_v34 = vpop.f32.mrb[81].mxu0  ;;  %v1332_v18 = vmul.f32 0.3275911, %v1323_v28  ;;  %v1324_v45 = vand.u32 2147483647, %v2516_v14 }
 0x189   : > { %v1165_v37 = vadd.f32 %v1145_v32, %v2479_v47  ;;  %v1929_v35 = vpop.f32.mrb[81].mxu1  ;;  %v1259_v58 = vpop.f32.mrb[82].mxu0  ;;  %v1449_v47 = vsub.f32 0.0, %v1323_v28  ;;  %vm1504_vm10 = vcmp.ge.f32.partialorder %v2516_v14, 0.0 }
 0x18a   : > { %v2521_v61 = vadd.f32 %v2488_v11, %v1282_v31  ;;  %v1148_v63 = vpop.f32.mrb[82].mxu1  ;;  %v1283_v52 = vadd.f32 %v1259_v58, %v1164_v4  ;;  %v1948_v5 = vpop.f32.mrb[83].mxu0  ;;  %v1341_v8 = vadd.f32 1.0, %v1332_v18  ;;  %v1333_v40 = vmul.f32 0.3275911, %v1324_v45 }
 0x18b   : > { %v1166_v43 = vadd.f32 %v1148_v63, %v2481_v20  ;;  %v1930_v36 = vpop.f32.mrb[83].mxu1  ;;  %v1450_v38 = vsub.f32 0.0, %v1324_v45  ;;  %v2534_v20 = vmul.f32 0.5, %v2491_v62  ;;  %v1458_v3 = vmul.f32 %v1449_v47, %v1323_v28 }
 0x18c   : > { %v2525_v21 = vmul.f32 0.70710677, %v2521_v61  ;;  %1975 = vrcp.f32 %v1341_v8  ;;  %v2528_v42 = vadd.f32 %v2488_v11, %v1283_v52  ;;  %v1342_v1 = vadd.f32 1.0, %v1333_v40 }
 0x18d   : > { %v1459_v19 = vmul.f32 %v1450_v38, %v1324_v45  ;;  %v1469_v32 = vmul.f32 1.442695, %v1458_v3 }
 0x18e   : > { %v2530_v41 = vpop.eup %1971  ;;  %v1325_v27 = vand.u32 2147483647, %v2525_v21  ;;  %v2538_v49 = vmul.f32 0.70710677, %v2528_v42  ;;  %1977 = vrcp.f32 %v1342_v1  ;;  %vm1505_vm11 = vcmp.ge.f32.partialorder %v2525_v21, 0.0 }
 0x18f   : > { %v1366_v48 = vmul.f32 1.0614054, %v2530_v41  ;;  %v1264_v53 = vpop.f32.mrb[84].mxu0  ;;  %1979 = vpow2.f32 %v1465_v44  ;;  %v1471_v26 = vmul.f32 1.442695, %v1459_v19 }
 0x190   : > { %v1334_v46 = vmul.f32 0.3275911, %v1325_v27  ;;  %v1451_v2 = vsub.f32 0.0, %v1325_v27  ;;  %v1153_v7 = vpop.f32.mrb[84].mxu1  ;;  %v2540_v29 = vpop.eup %1973  ;;  %v1326_v10 = vand.u32 2147483647, %v2538_v49  ;;  %v1284_v16 = vadd.f32 %v1264_v53, %v1165_v37 }
 0x191   : > { %v1375_v33 = vadd.f32 -1.4531521, %v1366_v48  ;;  %v1167_v62 = vadd.f32 %v1153_v7, %v2483_v17  ;;  %v1951_v15 = vpop.f32.mrb[85].mxu0  ;;  %v1367_v23 = vmul.f32 1.0614054, %v2540_v29  ;;  %v1933_v50 = vpop.f32.mrb[85].mxu1 }
 0x192   : > { %v1343_v24 = vadd.f32 1.0, %v1334_v46  ;;  %v1267_v25 = vpop.f32.mrb[86].mxu0  ;;  %v1460_v12 = vmul.f32 %v1451_v2, %v1325_v27  ;;  %v1335_v51 = vmul.f32 0.3275911, %v1326_v10  ;;  %v1156_v4 = vpop.f32.mrb[86].mxu1  ;;  %v2550_v34 = vadd.f32 %v2488_v11, %v1284_v16 }
 0x193   : > { %v1384_v9 = vmul.f32 %v2530_v41, %v1375_v33  ;;  %v1952_v13 = vpop.f32.mrb[87].mxu0  ;;  %v1376_v28 = vadd.f32 -1.4531521, %v1367_v23  ;;  %v1285_v17 = vadd.f32 %v1267_v25, %v1166_v43  ;;  %v1934_v54 = vpop.f32.mrb[87].mxu1  ;;  %v1452_v35 = vsub.f32 0.0, %v1326_v10 }
 0x194   : > { %1981 = vrcp.f32 %v1343_v24  ;;  %v1344_v31 = vadd.f32 1.0, %v1335_v51  ;;  %v1473_v45 = vmul.f32 1.442695, %v1460_v12  ;;  %v2561_v8 = vmul.f32 0.70710677, %v2550_v34 }
 0x195   : > { %v1393_v30 = vadd.f32 1.4214138, %v1384_v9  ;;  %v1385_v18 = vmul.f32 %v2540_v29, %v1376_v28  ;;  %1983 = vpow2.f32 %v1467_v55  ;;  %v2554_v37 = vadd.f32 %v2488_v11, %v1285_v17 }
 0x196   : > { %v2556_v58 = vpop.eup %1975  ;;  %1985 = vrcp.f32 %v1344_v31  ;;  %v1461_v27 = vmul.f32 %v1452_v35, %v1326_v10  ;;  %v1327_v48 = vand.u32 2147483647, %v2561_v8  ;;  %vm1506_vm12 = vcmp.ge.f32.partialorder %v2538_v49, 0.0 }
 0x197   : > { %v1402_v0 = vmul.f32 %v2530_v41, %v1393_v30  ;;  %v1272_v63 = vpop.f32.mrb[88].mxu0  ;;  %v1394_v52 = vadd.f32 1.4214138, %v1385_v18  ;;  %v1368_v5 = vmul.f32 1.0614054, %v2556_v58  ;;  %1987 = vpow2.f32 %v1469_v32 }
 0x198   : > { %v1286_v43 = vadd.f32 %v1272_v63, %v1167_v62  ;;  %v2567_v40 = vmul.f32 0.70710677, %v2554_v37  ;;  %v1955_v47 = vpop.f32.mrb[89].mxu0  ;;  %v2569_v44 = vpop.eup %1977  ;;  %1989 = vpow2.f32 %v1471_v26  ;;  %v1336_v62 = vmul.f32 0.3275911, %v1327_v48 }
 0x199   : > { %v1411_v36 = vadd.f32 -0.28449672, %v1402_v0  ;;  %v1403_v1 = vmul.f32 %v2540_v29, %v1394_v52  ;;  %v1377_v38 = vadd.f32 -1.4531521, %v1368_v5  ;;  %v1275_v53 = vpop.f32.mrb[90].mxu0  ;;  %v1980_v7 = vpop.eup %1979  ;;  %v1453_v15 = vsub.f32 0.0, %v1327_v48 }
 0x19a   : > { %v1369_v46 = vmul.f32 1.0614054, %v2569_v44  ;;  %v1328_v60 = vand.u32 2147483647, %v2567_v40  ;;  %v1956_v2 = vpop.f32.mrb[91].mxu0  ;;  %1991 = vpow2.f32 %v1473_v45  ;;  %v1345_v12 = vadd.f32 1.0, %v1336_v62 }
 0x19b   : > { %v1420_v55 = vmul.f32 %v2530_v41, %v1411_v36  ;;  %v1412_v33 = vadd.f32 -0.28449672, %v1403_v1  ;;  %v1386_v3 = vmul.f32 %v2556_v58, %v1377_v38  ;;  %v1475_v9 = vmul.f32 1.442695, %v1461_v27 }
 0x19c   : > { %v1378_v19 = vadd.f32 -1.4531521, %v1369_v46  ;;  %v1337_v10 = vmul.f32 0.3275911, %v1328_v60  ;;  %1993 = vrcp.f32 %v1345_v12  ;;  %v1462_v30 = vmul.f32 %v1453_v15, %v1327_v48 }
 0x19d   : > { %v1429_v23 = vadd.f32 0.2548296, %v1420_v55  ;;  %v1421_v25 = vmul.f32 %v2540_v29, %v1412_v33  ;;  %v1395_v50 = vadd.f32 1.4214138, %v1386_v3  ;;  %v2591_v45 = vadd.f32 %v2488_v11, %v1286_v43 }
 0x19e   : > { %v2577_v24 = vpop.eup %1981  ;;  %v1387_v16 = vmul.f32 %v2569_v44, %v1378_v19  ;;  %v1346_v4 = vadd.f32 1.0, %v1337_v10  ;;  %v1454_v47 = vsub.f32 0.0, %v1328_v60  ;;  %v1477_v48 = vmul.f32 1.442695, %v1462_v30 }
 0x19f   : > { %v1438_v51 = vmul.f32 %v2530_v41, %v1429_v23  ;;  %v1370_v13 = vmul.f32 1.0614054, %v2577_v24  ;;  %v1984_v28 = vpop.eup %1983  ;;  %v1430_v17 = vadd.f32 0.2548296, %v1421_v25  ;;  %v1404_v54 = vmul.f32 %v2556_v58, %v1395_v50 }
 0x1a0   : > { %v2585_v32 = vpop.eup %1985  ;;  %v1396_v18 = vadd.f32 1.4214138, %v1387_v16  ;;  %1995 = vrcp.f32 %v1346_v4  ;;  %v1463_v2 = vmul.f32 %v1454_v47, %v1328_v60  ;;  %v2599_v33 = vmul.f32 0.70710677, %v2591_v45 }
 0x1a1   : > { %v1483_v31 = vmul.f32 %v1980_v7, %v1438_v51  ;;  %v1379_v35 = vadd.f32 -1.4531521, %v1370_v13  ;;  %v1439_v41 = vmul.f32 %v2540_v29, %v1430_v17  ;;  %v1413_v0 = vadd.f32 -0.28449672, %v1404_v54  ;;  %v1988_v63 = vpop.eup %1987 }
 0x1a2   : > { %v1371_v26 = vmul.f32 1.0614054, %v2585_v32  ;;  %v1405_v5 = vmul.f32 %v2569_v44, %v1396_v18  ;;  %v1990_v53 = vpop.eup %1989  ;;  %v1479_v19 = vmul.f32 1.442695, %v1463_v2  ;;  %1997 = vpow2.f32 %v1475_v9 }
 0x1a3   : > { %v1492_v52 = vsub.f32 1.0, %v1483_v31  ;;  %v1388_v36 = vmul.f32 %v2577_v24, %v1379_v35  ;;  %v1484_v1 = vmul.f32 %v1984_v28, %v1439_v41  ;;  %v1422_v38 = vmul.f32 %v2556_v58, %v1413_v0 }
 0x1a4   : > { %v1380_v27 = vadd.f32 -1.4531521, %v1371_v26  ;;  %v1414_v55 = vadd.f32 -0.28449672, %v1405_v5  ;;  %v1992_v3 = vpop.eup %1991  ;;  %v2613_v51 = vand.u32 2147483647, %v2599_v33  ;;  %1999 = vpow2.f32 %v1477_v48 }
 0x1a5   : > { %v1510_v29 = vsub.f32 0.0, %v1492_v52  ;;  %v1397_v46 = vadd.f32 1.4214138, %v1388_v36  ;;  %v1493_v11 = vsub.f32 1.0, %v1484_v1  ;;  %v1431_v43 = vadd.f32 0.2548296, %v1422_v38 }
 0x1a6   : > { %v1389_v7 = vmul.f32 %v2585_v32, %v1380_v27  ;;  %v1423_v15 = vmul.f32 %v2569_v44, %v1414_v55  ;;  %v2615_v16 = vpop.eup %1993  ;;  %v1338_v5 = vmul.f32 0.3275911, %v2613_v51  ;;  %2001 = vpow2.f32 %v1479_v19 }
 0x1a7   : > { %v1519_v62 = vsel %vm1501_vm6, %v1492_v52, %v1510_v29  ;;  %v1406_v23 = vmul.f32 %v2577_v24, %v1397_v46  ;;  %v1511_v60 = vsub.f32 0.0, %v1493_v11  ;;  %v1440_v25 = vmul.f32 %v2556_v58, %v1431_v43 }
 0x1a8   : > { %v1528_v10 = vadd.f32 1.0, %v1519_v62  ;;  %v1398_v50 = vadd.f32 1.4214138, %v1389_v7  ;;  %v1432_v56 = vadd.f32 0.2548296, %v1423_v15  ;;  %v1347_v48 = vadd.f32 1.0, %v1338_v5 }
 0x1a9   : > { %v1415_v12 = vadd.f32 -0.28449672, %v1406_v23  ;;  %v1520_v58 = vsel %vm1502_vm8, %v1493_v11, %v1511_v60  ;;  %v1485_v4 = vmul.f32 %v1988_v63, %v1440_v25  ;;  %v1372_v31 = vmul.f32 1.0614054, %v2615_v16 }
 0x1aa   : > { %v1537_v13 = vmul.f32 %v1528_v10, %v2534_v20  ;;  %v1407_v28 = vmul.f32 %v2585_v32, %v1398_v50  ;;  %v2621_v17 = vpop.eup %1995  ;;  %v1529_v54 = vadd.f32 1.0, %v1520_v58  ;;  %v1441_v30 = vmul.f32 %v2569_v44, %v1432_v56 }
 0x1ab   : > { %v1424_v9 = vmul.f32 %v2577_v24, %v1415_v12  ;;  %v1494_v18 = vsub.f32 1.0, %v1485_v4  ;;  %v1373_v6 = vmul.f32 1.0614054, %v2621_v17  ;;  %v1381_v26 = vadd.f32 -1.4531521, %v1372_v31 }
 0x1ac   : > { %1547 = vst.msk [vmem:[%s2610_s15] sm:$0xff] %vm1546_vm7, %v1537_v13  ;;  %v1416_v20 = vadd.f32 -0.28449672, %v1407_v28  ;;  %v1538_v35 = vmul.f32 %v1529_v54, %v2547_v59  ;;  %v1486_v41 = vmul.f32 %v1990_v53, %v1441_v30  ;;  %2003 = vrcp.f32 %v1347_v48  ;;  %v1998_v11 = vpop.eup %1997 }
 0x1ad   : > { %v1433_v0 = vadd.f32 0.2548296, %v1424_v9  ;;  %v1512_v63 = vsub.f32 0.0, %v1494_v18  ;;  %v1382_v52 = vadd.f32 -1.4531521, %v1373_v6  ;;  %v1390_v1 = vmul.f32 %v2615_v16, %v1381_v26 }
 0x1ae   : > { %v1425_v44 = vmul.f32 %v2585_v32, %v1416_v20  ;;  %1548 = vst.msk [vmem:[%s2610_s15 + $0x8] sm:$0xff] %vm1546_vm7, %v1538_v35  ;;  %v1495_v36 = vsub.f32 1.0, %v1486_v41  ;;  %v1306_v15 = vmul.f32 0.5, %v2512_v57  ;;  %v2000_v10 = vpop.eup %1999  ;;  %v1307_v50 = vmul.f32 0.5, %v2521_v61 }
 0x1af   : > { %v1442_v47 = vmul.f32 %v2577_v24, %v1433_v0  ;;  %v1521_v59 = vsel %vm1503_vm9, %v1494_v18, %v1512_v63  ;;  %v1391_v27 = vmul.f32 %v2621_v17, %v1382_v52  ;;  %v1399_v46 = vadd.f32 1.4214138, %v1390_v1 }
 0x1b0   : > { %v1434_v38 = vadd.f32 0.2548296, %v1425_v44  ;;  %v1530_v53 = vadd.f32 1.0, %v1521_v59  ;;  %v1513_v29 = vsub.f32 0.0, %v1495_v36  ;;  %v1455_v4 = vsub.f32 0.0, %v2613_v51  ;;  %v2002_v28 = vpop.eup %2001 }
 0x1b1   : > { %v1487_v55 = vmul.f32 %v1992_v3, %v1442_v47  ;;  %v1400_v24 = vadd.f32 1.4214138, %v1391_v27  ;;  %v1408_v62 = vmul.f32 %v2615_v16, %v1399_v46  ;;  %v1308_v9 = vmul.f32 0.5, %v2528_v42 }
 0x1b2   : > { %v1443_v2 = vmul.f32 %v2585_v32, %v1434_v38  ;;  %v1539_v43 = vmul.f32 %v1530_v53, %v2564_v39  ;;  %v1522_v22 = vsel %vm1504_vm10, %v1495_v36, %v1513_v29  ;;  %v1464_v35 = vmul.f32 %v1455_v4, %v2613_v51 }
 0x1b3   : > { %v1496_v7 = vsub.f32 1.0, %v1487_v55  ;;  %v1531_v23 = vadd.f32 1.0, %v1522_v22  ;;  %v1409_v3 = vmul.f32 %v2621_v17, %v1400_v24  ;;  %v1417_v32 = vadd.f32 -0.28449672, %v1408_v62 }
 0x1b4   : > { %v1488_v19 = vmul.f32 %v1998_v11, %v1443_v2  ;;  %1549 = vst.msk [vmem:[%s2610_s15 + $0x10] sm:$0xff] %vm1546_vm7, %v1539_v43  ;;  %v1481_v42 = vmul.f32 1.442695, %v1464_v35  ;;  %vm1507_vm13 = vcmp.ge.f32.partialorder %v2561_v8, 0.0  ;;  %vm1508_vm14 = vcmp.ge.f32.partialorder %v2567_v40, 0.0 }
 0x1b5   : > { %v1514_v14 = vsub.f32 0.0, %v1496_v7  ;;  %v1540_v60 = vmul.f32 %v1531_v23, %v1306_v15  ;;  %v1418_v25 = vadd.f32 -0.28449672, %v1409_v3  ;;  %v1426_v12 = vmul.f32 %v2615_v16, %v1417_v32 }
 0x1b6   : > { %v1497_v39 = vsub.f32 1.0, %v1488_v19  ;;  %v2004_v20 = vpop.eup %2003  ;;  %v1309_v47 = vmul.f32 0.5, %v2550_v34  ;;  %2005 = vpow2.f32 %v1481_v42  ;;  %v1310_v38 = vmul.f32 0.5, %v2554_v37 }
 0x1b7   : > { %v1523_v56 = vsel %vm1505_vm11, %v1496_v7, %v1514_v14  ;;  %1550 = vst.msk [vmem:[%s2610_s15 + $0x18] sm:$0xff] %vm1546_vm7, %v1540_v60  ;;  %v1427_v58 = vmul.f32 %v2621_v17, %v1418_v25  ;;  %v1435_v21 = vadd.f32 0.2548296, %v1426_v12  ;;  %v1374_v49 = vmul.f32 1.0614054, %v2004_v20 }
 0x1b8   : > { %v1532_v57 = vadd.f32 1.0, %v1523_v56  ;;  %v1515_v13 = vsub.f32 0.0, %v1497_v39  ;;  %vm1509_vm15 = vcmp.ge.f32.partialorder %v2599_v33, 0.0  ;;  %v1311_v43 = vmul.f32 0.5, %v2591_v45 }
 0x1b9   : > { %v1436_v61 = vadd.f32 0.2548296, %v1427_v58  ;;  %v1444_v18 = vmul.f32 %v2615_v16, %v1435_v21  ;;  %v1383_v44 = vadd.f32 -1.4531521, %v1374_v49 }
 0x1ba   : > { %v1541_v54 = vmul.f32 %v1532_v57, %v1307_v50  ;;  %v1524_v30 = vsel %vm1506_vm12, %v1497_v39, %v1515_v13 }
 0x1bb   : > { %v1533_v31 = vadd.f32 1.0, %v1524_v30  ;;  %v1445_v6 = vmul.f32 %v2621_v17, %v1436_v61  ;;  %v1489_v0 = vmul.f32 %v2000_v10, %v1444_v18  ;;  %v1392_v36 = vmul.f32 %v2004_v20, %v1383_v44 }
 0x1bc   : > { %1551 = vst.msk [vmem:[%s2610_s15 + $0x20] sm:$0xff] %vm1546_vm7, %v1541_v54 }
 0x1bd   : > { %v1542_v41 = vmul.f32 %v1533_v31, %v1308_v9  ;;  %v1490_v26 = vmul.f32 %v2002_v28, %v1445_v6  ;;  %v1498_v63 = vsub.f32 1.0, %v1489_v0  ;;  %v1401_v51 = vadd.f32 1.4214138, %v1392_v36 }
 0x1bf   : > { %1552 = vst.msk [vmem:[%s2610_s15 + $0x28] sm:$0xff] %vm1546_vm7, %v1542_v41  ;;  %v1499_v52 = vsub.f32 1.0, %v1490_v26  ;;  %v1516_v5 = vsub.f32 0.0, %v1498_v63  ;;  %v1410_v48 = vmul.f32 %v2004_v20, %v1401_v51 }
 0x1c0   : > { %v2006_v2 = vpop.eup %2005 }
 0x1c1   : > { %v1517_v16 = vsub.f32 0.0, %v1499_v52  ;;  %v1525_v17 = vsel %vm1507_vm13, %v1498_v63, %v1516_v5  ;;  %v1419_v55 = vadd.f32 -0.28449672, %v1410_v48 }
 0x1c2   : > { %v1534_v1 = vadd.f32 1.0, %v1525_v17 }
 0x1c3   : > { %v1526_v59 = vsel %vm1508_vm14, %v1499_v52, %v1517_v16  ;;  %v1428_v8 = vmul.f32 %v2004_v20, %v1419_v55 }
 0x1c4   : > { %v1535_v27 = vadd.f32 1.0, %v1526_v59  ;;  %v1543_v53 = vmul.f32 %v1534_v1, %v1309_v47 }
 0x1c5   : > { %v1437_v40 = vadd.f32 0.2548296, %v1428_v8 }
 0x1c6   : > { %v1544_v29 = vmul.f32 %v1535_v27, %v1310_v38  ;;  %1553 = vst.msk [vmem:[%s2610_s15 + $0x30] sm:$0xff] %vm1546_vm7, %v1543_v53 }
 0x1c7   : > { %v1446_v46 = vmul.f32 %v2004_v20, %v1437_v40 }
 0x1c8   : > { %1554 = vst.msk [vmem:[%s2610_s15 + $0x38] sm:$0xff] %vm1546_vm7, %v1544_v29 }
 0x1c9   : > { %v1491_v34 = vmul.f32 %v2006_v2, %v1446_v46 }
 0x1cb   : > { %v1500_v24 = vsub.f32 1.0, %v1491_v34 }
 0x1cd   : > { %v1518_v11 = vsub.f32 0.0, %v1500_v24 }
 0x1cf   : > { %v1527_v37 = vsel %vm1509_vm15, %v1500_v24, %v1518_v11 }
 0x1d0   : > { %v1536_v22 = vadd.f32 1.0, %v1527_v37 }
 0x1d2   : > { %v1545_v7 = vmul.f32 %v1536_v22, %v1311_v43 }
 0x1d4   : > { %1555 = vst.msk [vmem:[%s2610_s15 + $0x40] sm:$0xff] %vm1546_vm7, %v1545_v7 }
 0x1d5 PF: > { %s13_s12 = sadd.s32 1, %s2013_s12  }
 0x1d6   : > { %p10_p4 = scmp.ge.s32.totalorder %s13_s12, 4  }
 0x1d8   :  { %12 = sbr.rel (!%p10_p4) target bundleno = 1 (0x1), region = 73 }

// kernel: resae_forward.7
= control target key start
LH: loop header
LB: loop body
LE: loop exit
PB: predicated region body
PF: predicated region fallthrough
CT: control target
= control target key end

     0   :  { %s373_s12 = smov 0   ;;  %s399_s0 = inlined_call_operand.vmem [shape: f32[32,32], index: 0, kind: input, shape index: {}]   ;;  %s400_s1 = inlined_call_operand.vmem [shape: bf16[32,64], index: 1, kind: input, shape index: {}]   ;;  %s401_s2 = inlined_call_operand.vmem [shape: f32[1,64], index: 2, kind: input, shape index: {}]   ;;  %s402_s3 = inlined_call_operand.vmem [shape: f32[32,64], index: 3, kind: output, shape index: {}]  }
   0x1 LB: > { %s305_s13 = sadd.s32 4294967295, %s349_s12   ;;  %p309_p0 = scmp.ge.s32.totalorder %s349_s12, 1  ;;  %s349_s12 = sphi %s373_s12, %s13_s12  }
   0x2   : > { %p138_p1 = scmp.lt.s32.totalorder %s349_s12, 3 }
   0x4   : > { %p139_p2 = pnand %p309_p0, %p138_p1 }
   0x5   : > { %v341_v0 = vld [vmem:[%s400_s1] sm:$0xff] (!%p139_p2)   ;;  %v351_v1 = vmov (!%p139_p2), 0.0   ;;  %v342_v2 = vld [vmem:[%s400_s1 + $0x8] sm:$0xff] (!%p139_p2)   ;;  %vm352_vm0 = vmmov (!%p139_p2), 0   ;;  %s310_s18 = sshll.u32 (!%p139_p2), %s305_s13, 1  ;;  %vm201_vm1 = vcmask (!%p139_p2), 261120  }
   0x6   : > { %142 = sbr.rel (%p139_p2) target bundleno = 236 (0xec), region = 32  ;;  %323 = vmatprep.subr.bf16.mxu0 (!%p139_p2), %v351_v1  ;;  %327 = vmatprep.mubr.msk.bf16.mxu0 (!%p139_p2), %vm352_vm0, %v351_v1  ;;  %p163_p3 = scmp.lt.s32.totalorder (!%p139_p2), %s310_s18, 3  ;;  %v314_v6 = vld [vmem:[%s401_s2] ss:$0 sm:$0xff] (!%p139_p2)  ;;  %vm246_vm2 = vcmask (!%p139_p2), 523264  }
   0x7   : > { %324 = vmatpush3.bf16.msra.mxu0 (!%p139_p2), %v341_v0 }
   0x8   : > { %325 = vmatprep.subr.bf16.mxu0 (!%p139_p2), %v351_v1 }
   0xb   : > { %326 = vmatpush3.bf16.msra.mxu0 (!%p139_p2), %v342_v2 }
   0xd   : > { %s404_s18 = smov (!%p163_p3, %s310_s18), 3 }
   0xe   : > { %s311_s19 = sshll.u32 %s404_s18, 3 }
   0xf   : > { %s166_s22 = scalar_lea.vmem %s399_s0, %s311_s19  ;;  %s172_s27 = scalar_lea.vmem %s402_s3, %s311_s19 }
  0x10   : > { %v175_v3 = vld [vmem:[%s166_s22] sm:$0xff]  ;;  %v176_v4 = vld [vmem:[%s166_s22 + $0x8] sm:$0xff] }
  0x11   : > { %v177_v5 = vpack.c.bf16 %v176_v4, %v175_v3 }
  0x13   : > { %328 = vmatmul.mubr.msk.bf16.vlgmr.msra.gmra.mrb[0].mxu0 %vm201_vm1, %v177_v5 }
  0xe6   : > { %v239_v7 = vpop.f32.mrb[0].mxu0 }
  0xe7   : > { %v240_v8 = vadd.f32 %v314_v6, %v239_v7  ;;  %v329_v9 = vpop.f32.mrb[1].mxu0 }
  0xe8   : > { %v242_v10 = vpop.f32.mrb[2].mxu0 }
  0xe9   : > { %247 = vst.msk [vmem:[%s172_s27] sm:$0xff] %vm246_vm2, %v240_v8  ;;  %v243_v11 = vadd.f32 %v314_v6, %v242_v10  ;;  %v330_v12 = vpop.f32.mrb[3].mxu0 }
  0xeb   : > { %248 = vst.msk [vmem:[%s172_s27 + $0x8] sm:$0xff] %vm246_vm2, %v243_v11 }
  0xec PF: > { %s13_s12 = sadd.s32 1, %s349_s12  }
  0xed   : > { %p10_p4 = scmp.ge.s32.totalorder %s13_s12, 4  }
  0xef   :  { %12 = sbr.rel (!%p10_p4) target bundleno = 1 (0x1), region = 62 }

// kernel: resae_forward.6
= control target key start
LH: loop header
LB: loop body
LE: loop exit
PB: predicated region body
PF: predicated region fallthrough
CT: control target
= control target key end

     0   :  { %s1107_s12 = smov 0   ;;  %s1208_s0 = inlined_call_operand.vmem [shape: f32[2,2,2,32,16], index: 0, kind: input, shape index: {}]   ;;  %s1209_s1 = inlined_call_operand.vmem [shape: bf16[9,16,32], index: 1, kind: input, shape index: {}]   ;;  %s1210_s2 = inlined_call_operand.vmem [shape: f32[1,32], index: 2, kind: input, shape index: {}]   ;;  %s1211_s3 = inlined_call_operand.vmem [shape: f32[2,20,32], index: 3, kind: output, shape index: {}]  }
   0x1 LB: > { %s913_s13 = sadd.s32 4294967295, %s1085_s12   ;;  %p917_p0 = scmp.ge.s32.totalorder %s1085_s12, 1  ;;  %s1085_s12 = sphi %s1107_s12, %s13_s12  }
   0x2   : > { %p137_p1 = scmp.lt.s32.totalorder %s1085_s12, 3 }
   0x4   : > { %p138_p2 = pnand %p917_p0, %p137_p1 }
   0x5   : > { %v1070_v0 = vld [vmem:[%s1209_s1 + $0x8] sm:$0xff] (!%p138_p2)   ;;  %p161_p3 = scmp.lt.s32.totalorder (!%p138_p2), %s913_s13, 1  ;;  %v1071_v1 = vld [vmem:[%s1209_s1] sm:$0xff] (!%p138_p2)   ;;  %v1072_v2 = vld [vmem:[%s1209_s1 + $0x10] sm:$0xff] (!%p138_p2)   ;;  %vm210_vm0 = vcmask (!%p138_p2), 130048   ;;  %vm776_vm3 = vcmask (!%p138_p2), 1044480  }
   0x6   : > { %141 = sbr.rel (%p138_p2) target bundleno = 272 (0x110), region = 32  ;;  %1007 = vmatprep.subr.bf16.mxu0 (!%p138_p2), %v1070_v0  ;;  %1013 = vmatprep.subr.bf16.mxu1 (!%p138_p2), %v1071_v1  ;;  %v1073_v3 = vld [vmem:[%s1209_s1 + $0x18] sm:$0xff] (!%p138_p2)   ;;  %v1074_v7 = vld [vmem:[%s1209_s1 + $0x20] sm:$0xff] (!%p138_p2)   ;;  %v1075_v24 = vld [vmem:[%s1209_s1 + $0x28] sm:$0xff] (!%p138_p2)   ;;  %vm328_vm1 = vsmask.f32 (!%p138_p2), 7424 }
   0x7   : > { %1008 = vmatpush3.bf16.msra.mxu0 (!%p138_p2), %v1070_v0  ;;  %1014 = vmatpush3.bf16.msra.mxu1 (!%p138_p2), %v1071_v1  ;;  %v1076_v46 = vld [vmem:[%s1209_s1 + $0x30] sm:$0xff] (!%p138_p2)   ;;  %v1077_v53 = vld [vmem:[%s1209_s1 + $0x38] sm:$0xff] (!%p138_p2)   ;;  %vm619_vm2 = vsmask.f32 (!%p138_p2), 5376  ;;  %vm856_vm4 = vcmask (!%p138_p2), 257024   ;;  %vm853_vm5 = vcmask (!%p138_p2), 261120  }
   0x8   : > { %1019 = vmatprep.subr.bf16.mxu0 (!%p138_p2), %v1072_v2  ;;  %1025 = vmatprep.subr.bf16.mxu1 (!%p138_p2), %v1073_v3 }
   0xd   : > { %s1213_s13 = smov (!%p161_p3, %s913_s13), 1 }
   0xe   : > { %s979_s22 = sshll.u32 %s1213_s13, 7  ;;  %s1061_s9 = smul.u32 24, %s1213_s13 }
   0xf   : > { %s1133_s25 = scalar_lea.vmem %s1208_s0, %s979_s22 }
  0x10   : > { %v921_v4 = vld [vmem:[%s1133_s25 + $0x20] sm:$0xff]  ;;  %v922_v5 = vld [vmem:[%s1133_s25 + $0x28] sm:$0xff]  ;;  %v923_v10 = vld [vmem:[%s1133_s25 + $0x30] sm:$0xff]  ;;  %s170_s16 = scalar_lea.vmem %s1211_s3, %s1061_s9 }
  0x11   : > { %v172_v6 = vld [vmem:[%s1133_s25] sm:$0xff]  ;;  %v183_v8 = vpack.c.bf16 %v922_v5, %v921_v4  ;;  %v173_v9 = vld [vmem:[%s1133_s25 + $0x8] sm:$0xff]  ;;  %v924_v11 = vld [vmem:[%s1133_s25 + $0x38] sm:$0xff] }
  0x12   : > { %v1144_v12 = vpack.c.bf16 %v173_v9, %v172_v6  ;;  %v184_v13 = vpack.c.bf16 %v924_v11, %v923_v10  ;;  %v174_v14 = vld [vmem:[%s1133_s25 + $0x10] sm:$0xff]  ;;  %v175_v15 = vld [vmem:[%s1133_s25 + $0x18] sm:$0xff]  ;;  %v925_v16 = vld [vmem:[%s1133_s25 + $0x40] sm:$0xff] }
  0x13   : > { %1009 = vmatprep.mubr.msk.bf16.mxu0 %vm210_vm0, %v183_v8  ;;  %v1150_v17 = vpack.c.bf16 %v175_v15, %v174_v14  ;;  %v926_v18 = vld [vmem:[%s1133_s25 + $0x48] sm:$0xff]  ;;  %v927_v19 = vld [vmem:[%s1133_s25 + $0x50] sm:$0xff]  ;;  %v928_v20 = vld [vmem:[%s1133_s25 + $0x58] sm:$0xff]  ;;  %v693_v35 = vshrl.u32 %v183_v8, 16  ;;  %v696_v36 = vshll.u32 %v183_v8, 16 }
  0x14   : > { %1015 = vmatprep.mubr.msk.bf16.mxu1 %vm210_vm0, %v1144_v12  ;;  %1010 = vmatmul.mubr.msk.bf16.vlgmr.msra.gmra.mrb[0].mxu0 %vm210_vm0, %v184_v13  ;;  %v329_v21 = vshrl.u32 %v1144_v12, 16  ;;  %v331_v22 = vshll.u32 %v1144_v12, 16  ;;  %v190_v23 = vpack.c.bf16 %v926_v18, %v925_v16  ;;  %v191_v27 = vpack.c.bf16 %v928_v20, %v927_v19  ;;  %v929_v29 = vld [vmem:[%s1133_s25 + $0x60] sm:$0xff]  ;;  %v930_v30 = vld [vmem:[%s1133_s25 + $0x68] sm:$0xff]  ;;  %v931_v54 = vld [vmem:[%s1133_s25 + $0x70] sm:$0xff] }
  0x15   : > { %1016 = vmatmul.mubr.msk.bf16.vlgmr.msra.gmra.mrb[0].mxu1 %vm210_vm0, %v1150_v17  ;;  %1020 = vmatpush3.bf16.msra.mxu0 %v1072_v2  ;;  %v335_v25 = vshll.u32 %v1150_v17, 16  ;;  %v339_v26 = vshrl.u32 %v1150_v17, 16  ;;  %v197_v39 = vpack.c.bf16 %v930_v30, %v929_v29  ;;  %v700_v49 = vshrl.u32 %v184_v13, 16  ;;  %v932_v55 = vld [vmem:[%s1133_s25 + $0x78] sm:$0xff] }
  0x16   : > { %1026 = vmatpush3.bf16.msra.mxu1 %v1073_v3  ;;  %v333_v28 = vrot.slane %v331_v22, 1  ;;  %1031 = vmatprep.subr.bf16.mxu0 %v1074_v7  ;;  %v540_v32 = vshrl.u32 %v190_v23, 16  ;;  %v542_v33 = vshll.u32 %v190_v23, 16  ;;  %v546_v34 = vshll.u32 %v191_v27, 16  ;;  %v1078_v3 = vld [vmem:[%s1209_s1 + $0x40] sm:$0xff]  }
  0x17   : > { %v337_v31 = vrot.slane %v335_v25, 1  ;;  %1027 = vmatprep.mubr.msk.bf16.mxu1 %vm210_vm0, %v190_v23  ;;  %1037 = vmatprep.subr.bf16.mxu1 %v1075_v24  ;;  %v620_v43 = vrot.slane %v329_v21, 2  ;;  %v621_v44 = vrot.slane %v331_v22, 3  ;;  %v623_v45 = vrot.slane %v339_v26, 2 }
  0x18   : > { %v334_v37 = vor.u32 %v333_v28, %v329_v21  ;;  %v544_v40 = vrot.slane %v542_v33, 1  ;;  %v548_v41 = vrot.slane %v546_v34, 1  ;;  %v624_v48 = vrot.slane %v335_v25, 3 }
  0x19   : > { %v341_v38 = vor.u32 %v339_v26, %v337_v31  ;;  %v703_v50 = vshll.u32 %v184_v13, 16  ;;  %v695_v51 = vrot.slane %v693_v35, 2  ;;  %v698_v52 = vrot.slane %v696_v36, 3 }
  0x1a   : > { %v338_v42 = vsel %vm328_vm1, %v334_v37, %v337_v31  ;;  %v545_v47 = vor.u32 %v544_v40, %v540_v32  ;;  %v550_v57 = vshrl.u32 %v191_v27, 16  ;;  %v702_v58 = vrot.slane %v700_v49, 2 }
  0x1b   : > { %1021 = vmatprep.mubr.msk.bf16.mxu0 %vm210_vm0, %v338_v42  ;;  %v705_v59 = vrot.slane %v703_v50, 3  ;;  %v622_v60 = vor.u32 %v621_v44, %v620_v43  ;;  %v625_v61 = vor.u32 %v624_v48, %v623_v45  ;;  %v198_v62 = vpack.c.bf16 %v932_v55, %v931_v54 }
  0x1c   : > { %1022 = vmatmul.mubr.msk.bf16.vlgmr.msra.gmra.mrb[4].mxu0 %vm210_vm0, %v341_v38  ;;  %v549_v56 = vsel %vm328_vm1, %v545_v47, %v548_v41  ;;  %v699_v63 = vor.u32 %v698_v52, %v695_v51  ;;  %v552_v1 = vor.u32 %v550_v57, %v548_v41  ;;  %v777_v5 = vrot.slane %v1144_v12, 3 }
  0x1d   : > { %1032 = vmatpush3.bf16.msra.mxu0 %v1074_v7  ;;  %1028 = vmatmul.mubr.msk.bf16.vlgmr.msra.gmra.mrb[4].mxu1 %vm210_vm0, %v191_v27  ;;  %v706_v0 = vor.u32 %v705_v59, %v702_v58  ;;  %v626_v2 = vsel %vm619_vm2, %v622_v60, %v625_v61  ;;  %v778_v6 = vrot.slane %v1150_v17, 3 }
  0x1e   : > { %1038 = vmatpush3.bf16.msra.mxu1 %v1075_v24  ;;  %1033 = vmatprep.mubr.msk.bf16.mxu0 %vm210_vm0, %v197_v39 }
  0x1f   : > { %1043 = vmatprep.subr.bf16.mxu0 %v1076_v46  ;;  %1039 = vmatprep.mubr.msk.bf16.mxu1 %vm210_vm0, %v549_v56  ;;  %v707_v4 = vsel %vm619_vm2, %v699_v63, %v706_v0  ;;  %v779_v7 = vsel %vm776_vm3, %v777_v5, %v778_v6 }
  0x20   : > { %1049 = vmatprep.subr.bf16.mxu1 %v1077_v53 }
  0x24   : > { %1034 = vmatmul.mubr.msk.bf16.vlgmr.msra.gmra.mrb[8].mxu0 %vm210_vm0, %v198_v62  ;;  %v976_v62 = vld [vmem:[%s1210_s2] ss:$0 sm:$0xff] }
  0x25   : > { %1044 = vmatpush3.bf16.msra.mxu0 %v1076_v46  ;;  %1040 = vmatmul.mubr.msk.bf16.vlgmr.msra.gmra.mrb[8].mxu1 %vm210_vm0, %v552_v1 }
  0x26   : > { %1050 = vmatpush3.bf16.msra.mxu1 %v1077_v53  ;;  %1045 = vmatprep.mubr.msk.bf16.mxu0 %vm210_vm0, %v626_v2 }
  0x27   : > { %1055 = vmatprep.subr.bf16.mxu0 %v1078_v3  ;;  %1051 = vmatprep.mubr.msk.bf16.mxu1 %vm210_vm0, %v707_v4 }
  0x2c   : > { %1046 = vmatmul.mubr.msk.bf16.vlgmr.msra.gmra.mrb[12].mxu0 %vm210_vm0, %v625_v61 }
  0x2d   : > { %1056 = vmatpush3.bf16.msra.mxu0 %v1078_v3  ;;  %1052 = vmatmul.mubr.msk.bf16.vlgmr.msra.gmra.mrb[12].mxu1 %vm210_vm0, %v706_v0 }
  0x2e   : > { %1057 = vmatprep.mubr.msk.bf16.mxu0 %vm210_vm0, %v779_v7 }
  0x34   : > { %1058 = vmatmul.mubr.msk.bf16.vlgmr.msra.gmra.mrb[16].mxu0 %vm210_vm0, %v778_v6 }
  0xe7   : > { %v1011_v8 = vpop.f32.mrb[0].mxu0 }
  0xe8   : > { %v1017_v9 = vpop.f32.mrb[0].mxu1  ;;  %v251_v10 = vpop.f32.mrb[1].mxu0 }
  0xe9   : > { %v320_v11 = vadd.f32 %v1017_v9, %v1011_v8  ;;  %v311_v13 = vpop.f32.mrb[1].mxu1  ;;  %v1012_v14 = vpop.f32.mrb[2].mxu0 }
  0xea   : > { %v312_v12 = vadd.f32 %v311_v13, %v251_v10  ;;  %v1018_v15 = vpop.f32.mrb[2].mxu1  ;;  %v254_v16 = vpop.f32.mrb[3].mxu0 }
  0xeb   : > { %v314_v17 = vpop.f32.mrb[3].mxu1 }
  0xec   : > { %v315_v18 = vadd.f32 %v314_v17, %v254_v16 }
  0xef   : > { %v1023_v19 = vpop.f32.mrb[4].mxu0 }
  0xf0   : > { %v404_v20 = vadd.f32 %v1023_v19, %v320_v11  ;;  %v388_v21 = vpop.f32.mrb[5].mxu0  ;;  %v1029_v22 = vpop.f32.mrb[4].mxu1 }
  0xf1   : > { %v402_v23 = vadd.f32 %v388_v21, %v312_v12  ;;  %v1024_v24 = vpop.f32.mrb[6].mxu0  ;;  %v454_v25 = vpop.f32.mrb[5].mxu1 }
  0xf2   : > { %v470_v26 = vadd.f32 %v1029_v22, %v404_v20  ;;  %v391_v27 = vpop.f32.mrb[7].mxu0  ;;  %v1030_v28 = vpop.f32.mrb[6].mxu1 }
  0xf3   : > { %v403_v29 = vadd.f32 %v391_v27, %v315_v18  ;;  %v468_v30 = vadd.f32 %v454_v25, %v402_v23  ;;  %v457_v31 = vpop.f32.mrb[7].mxu1 }
  0xf5   : > { %v469_v32 = vadd.f32 %v457_v31, %v403_v29 }
  0xf7   : > { %v1035_v33 = vpop.f32.mrb[8].mxu0 }
  0xf8   : > { %v536_v34 = vadd.f32 %v1035_v33, %v470_v26  ;;  %v520_v35 = vpop.f32.mrb[9].mxu0  ;;  %v1041_v36 = vpop.f32.mrb[8].mxu1 }
  0xf9   : > { %v534_v37 = vadd.f32 %v520_v35, %v468_v30  ;;  %v1036_v38 = vpop.f32.mrb[10].mxu0  ;;  %v599_v39 = vpop.f32.mrb[9].mxu1 }
  0xfa   : > { %v615_v40 = vadd.f32 %v1041_v36, %v536_v34  ;;  %v523_v41 = vpop.f32.mrb[11].mxu0  ;;  %v1042_v42 = vpop.f32.mrb[10].mxu1 }
  0xfb   : > { %v535_v43 = vadd.f32 %v523_v41, %v469_v32  ;;  %v613_v44 = vadd.f32 %v599_v39, %v534_v37  ;;  %v602_v45 = vpop.f32.mrb[11].mxu1 }
  0xfd   : > { %v614_v46 = vadd.f32 %v602_v45, %v535_v43 }
  0xff   : > { %v1047_v47 = vpop.f32.mrb[12].mxu0 }
 0x100   : > { %v689_v48 = vadd.f32 %v1047_v47, %v615_v40  ;;  %v673_v49 = vpop.f32.mrb[13].mxu0  ;;  %v1053_v50 = vpop.f32.mrb[12].mxu1 }
 0x101   : > { %v687_v51 = vadd.f32 %v673_v49, %v613_v44  ;;  %v1048_v52 = vpop.f32.mrb[14].mxu0  ;;  %v754_v53 = vpop.f32.mrb[13].mxu1 }
 0x102   : > { %v770_v54 = vadd.f32 %v1053_v50, %v689_v48  ;;  %v676_v55 = vpop.f32.mrb[15].mxu0  ;;  %v1054_v56 = vpop.f32.mrb[14].mxu1 }
 0x103   : > { %v688_v57 = vadd.f32 %v676_v55, %v614_v46  ;;  %v768_v58 = vadd.f32 %v754_v53, %v687_v51  ;;  %v757_v59 = vpop.f32.mrb[15].mxu1 }
 0x105   : > { %v769_v60 = vadd.f32 %v757_v59, %v688_v57 }
 0x107   : > { %v1059_v61 = vpop.f32.mrb[16].mxu0 }
 0x108   : > { %v842_v63 = vadd.f32 %v1059_v61, %v770_v54  ;;  %v826_v0 = vpop.f32.mrb[17].mxu0 }
 0x109   : > { %v840_v1 = vadd.f32 %v826_v0, %v768_v58  ;;  %v1060_v2 = vpop.f32.mrb[18].mxu0 }
 0x10a   : > { %v852_v3 = vadd.f32 %v976_v62, %v842_v63  ;;  %v829_v4 = vpop.f32.mrb[19].mxu0 }
 0x10b   : > { %v850_v5 = vadd.f32 %v976_v62, %v840_v1  ;;  %v841_v6 = vadd.f32 %v829_v4, %v769_v60 }
 0x10c   : > { %857 = vst.msk [vmem:[%s170_s16 + $0x10] sm:$0xf] %vm856_vm4, %v852_v3 }
 0x10d   : > { %854 = vst.msk [vmem:[%s170_s16] sm:$0xff] %vm853_vm5, %v850_v5  ;;  %v851_v7 = vadd.f32 %v976_v62, %v841_v6 }
 0x10f   : > { %855 = vst.msk [vmem:[%s170_s16 + $0x8] sm:$0xff] %vm853_vm5, %v851_v7 }
 0x110 PF: > { %s13_s12 = sadd.s32 1, %s1085_s12  }
 0x111   : > { %p10_p4 = scmp.ge.s32.totalorder %s13_s12, 4  }
 0x113   :  { %12 = sbr.rel (!%p10_p4) target bundleno = 1 (0x1), region = 73 }

</bundles_post_ra>
